<compile_context>
chip_gen: v5e
topology: v5e:2x2
jax: 0.10.0
libtpu: 0.0.40
codegen_flags: <defaults>
</compile_context>

<pallas_src>
import functools

import numpy as np
import jax
import jax.numpy as jnp
from jax.experimental import pallas as pl
from jax.experimental.pallas import tpu as pltpu


# ----------------------------------------------------------------------------
# Fused forward kernel: one grid step == B images, everything stays in VMEM.
# ----------------------------------------------------------------------------
def _fused_forward_kernel(
    # inputs
    x_ref,
    wb1, br1, wb2, br2, wb3, br3, wb4, br4, wb5, br5, wb6, br6,
    r1, c1, r2, c2,
    fw1_ref, fb1_ref, fw2_ref, fb2_ref,
    # output
    o_ref,
    # scratch (row-zero-padded activation buffers + flattened features)
    p1, p2, p3, p4, p5, p6, feat,
    *, Bb, H1, W1, Hf,
):
    H2, W2 = H1 // 2, W1 // 2
    f32 = jnp.float32

    def zero_borders(pad_ref, H):
        # Only the two halo rows per image need zeroing; the interior is fully
        # overwritten every step.  Done every step (not just at program_id==0)
        # so megacore grid sharding (per-core scratch) stays correct.
        z = jnp.zeros((Bb, 1, pad_ref.shape[2]), f32)
        pad_ref[:, 0:1, :] = z
        pad_ref[:, H + 1:H + 2, :] = z

    def conv(pad_ref, wb_ref, b_ref, H, relu):
        # pad_ref: (Bb, H+2, W*cin)  row-padded activations, channels minor.
        # wb_ref:  (3, W*cin, W*cout) banded weights (one band per dy); the band
        #          encodes all 3 dx taps and the width-direction zero padding.
        Kw = pad_ref.shape[2]
        Nw = wb_ref.shape[2]
        acc = jnp.zeros((Bb * H, Nw), f32)
        for dy in range(3):
            patch = pad_ref[:, dy:dy + H, :].reshape(Bb * H, Kw)
            acc = acc + jnp.dot(patch, wb_ref[dy], preferred_element_type=f32)
        acc = acc + b_ref[...]
        if relu:
            acc = jnp.maximum(acc, 0.0)
        return acc

    def pool(y, r_ref, c_ref):
        # 2x2 max-pool via 0/1 row/column selection matmuls (exact picks).
        rows = jnp.maximum(jnp.dot(r_ref[0], y, preferred_element_type=f32),
                           jnp.dot(r_ref[1], y, preferred_element_type=f32))
        return jnp.maximum(jnp.dot(rows, c_ref[0], preferred_element_type=f32),
                           jnp.dot(rows, c_ref[1], preferred_element_type=f32))

    for pad_ref, H in ((p1, H1), (p2, H1), (p3, H2), (p4, H2), (p5, H2), (p6, H2)):
        zero_borders(pad_ref, H)

    # ---- stage 1: conv1, conv2(+ReLU) at (H1, W1), then 2x2 max-pool --------
    p1[:, 1:H1 + 1, :] = x_ref[...]
    y1 = conv(p1, wb1, br1, H1, relu=False)                  # (Bb*H1, W1*6)
    p2[:, 1:H1 + 1, :] = y1.reshape(Bb, H1, W1 * 6)
    y2 = conv(p2, wb2, br2, H1, relu=True)                   # (Bb*H1, W1*6)
    pool1 = pool(y2, r1, c1)                                 # (Bb*H2, W2*6)

    # ---- stage 2: conv3..conv6 at (H2, W2), then 2x2 max-pool ---------------
    p3[:, 1:H2 + 1, :] = pool1.reshape(Bb, H2, W2 * 6)
    y3 = conv(p3, wb3, br3, H2, relu=False)
    p4[:, 1:H2 + 1, :] = y3.reshape(Bb, H2, W2 * 12)
    y4 = conv(p4, wb4, br4, H2, relu=True)
    p5[:, 1:H2 + 1, :] = y4.reshape(Bb, H2, W2 * 12)
    y5 = conv(p5, wb5, br5, H2, relu=False)
    p6[:, 1:H2 + 1, :] = y5.reshape(Bb, H2, W2 * 12)
    y6 = conv(p6, wb6, br6, H2, relu=True)                   # (Bb*H2, W2*12)
    pool2 = pool(y6, r2, c2)                                 # (Hf*Bb, Wf*12), h-major rows

    # ---- fused FC head ------------------------------------------------------
    # fc1 weights are host-permuted to (Hf, Wf*12, 100) so the per-h contiguous
    # row slices of `feat` reproduce PyTorch's channel-major Flatten exactly.
    feat[...] = pool2
    acc = jnp.zeros((Bb, fw1_ref.shape[2]), f32)
    for h in range(Hf):                                      # Hf dots of (Bb, Wf*12)@(Wf*12, 100)
        acc = acc + jnp.dot(feat[h * Bb:(h + 1) * Bb, :], fw1_ref[h],
                            preferred_element_type=f32)
    hidden = jnp.maximum(acc + fb1_ref[...], 0.0)            # fc1 + ReLU
    out = jnp.dot(hidden, fw2_ref[...], preferred_element_type=f32) + fb2_ref[...]
    o_ref[0] = out.astype(o_ref.dtype)


# ----------------------------------------------------------------------------
# Host-side weight preparation helpers (all jit-traceable; masks are static).
# ----------------------------------------------------------------------------
def _banded_conv_weight(w_hwio, W):
    # w_hwio: (3, 3, cin, cout)  ->  (3, W*cin, W*cout) banded matrices.
    # band[dy][xp*cin + c, x*cout + o] = w[dy, dx, c, o]  where xp == x + dx - 1,
    # zero otherwise (this also implements the width-direction zero padding).
    _, _, cin, cout = w_hwio.shape
    mask = np.zeros((W, W, 3), np.float32)
    for x in range(W):
        for dx in range(3):
            p = x + dx - 1
            if 0 <= p < W:
                mask[p, x, dx] = 1.0
    t = jnp.einsum("pxd,ydco->ypcxo", mask, w_hwio.astype(jnp.float32))
    return t.reshape(3, W * cin, W * cout)


def _conv_bias_row(b, W):
    return jnp.tile(b.astype(jnp.float32), W).reshape(1, -1)   # (1, W*cout)


def _pool_mats(Bb, Hin, Win, C, h_major):
    # Row-selection (2, rows_out, Bb*Hin) and column-selection (2, Win*C, Wout*C)
    # 0/1 matrices implementing a 2x2 max-pool when combined with jnp.maximum.
    Hout, Wout = Hin // 2, Win // 2
    R = np.zeros((2, Bb * Hout, Bb * Hin), np.float32)
    for b in range(Bb):
        for i in range(Hout):
            r = i * Bb + b if h_major else b * Hout + i
            R[0, r, b * Hin + 2 * i] = 1.0
            R[1, r, b * Hin + 2 * i + 1] = 1.0
    Cm = np.zeros((2, Win * C, Wout * C), np.float32)
    for j in range(Wout):
        for c in range(C):
            Cm[0, (2 * j) * C + c, j * C + c] = 1.0
            Cm[1, (2 * j + 1) * C + c, j * C + c] = 1.0
    return jnp.asarray(R), jnp.asarray(Cm)


# ----------------------------------------------------------------------------
# Wrapper: one pallas_call for the whole ClassModel forward.
# ----------------------------------------------------------------------------
def class_model_forward(x_nchw, params, batch_block=None):
    N, Cin, H1, W1 = x_nchw.shape
    # TODO(synk): floor-mode pooling for odd spatial sizes (e.g. the 50x50
    # default config) is not implemented; this kernel requires H, W % 4 == 0.
    assert H1 % 4 == 0 and W1 % 4 == 0, "spatial dims must be divisible by 4"
    H2, W2 = H1 // 2, W1 // 2
    Hf, Wf = H2 // 2, W2 // 2
    classes = params["fc2_w"].shape[-1]
    fo = params["fc1_w"].shape[-1]

    # images per grid step: keep >=2 grid steps (v7x 2-TC sharding) when N >= 2.
    if batch_block is None:
        target = max(1, N // 2)
        bb = 1
        for d in range(1, min(N, 16) + 1):
            if N % d == 0 and d <= target:
                bb = d
    else:
        bb = batch_block
    assert N % bb == 0
    steps = N // bb

    # Pack input rows on the host: NCHW -> (N, H, W*Cin), channels minor.
    x_p = jnp.transpose(x_nchw, (0, 2, 3, 1)).reshape(N, H1, W1 * Cin).astype(jnp.float32)

    R1, C1 = _pool_mats(bb, H1, W1, 6, h_major=False)
    R2, C2 = _pool_mats(bb, H2, W2, 12, h_major=True)

    # fc1 weight: PyTorch flatten order is channel-major (c, h, w); permute to
    # (h, w*12 + c, out) so contiguous per-h row slices of the feature buffer
    # reproduce it exactly.
    fc1_w = params["fc1_w"].astype(jnp.float32)                 # (Hf*Wf*12, fo)
    assert fc1_w.shape[0] == Hf * Wf * 12
    fw1 = fc1_w.reshape(12, Hf, Wf, fo).transpose(1, 2, 0, 3).reshape(Hf, Wf * 12, fo)
    fb1 = params["fc1_b"].reshape(1, -1).astype(jnp.float32)
    fw2 = params["fc2_w"].astype(jnp.float32)                   # (100, classes)
    fb2 = params["fc2_b"].reshape(1, -1).astype(jnp.float32)

    inputs = (
        x_p,
        _banded_conv_weight(params["conv1_w"], W1), _conv_bias_row(params["conv1_b"], W1),
        _banded_conv_weight(params["conv2_w"], W1), _conv_bias_row(params["conv2_b"], W1),
        _banded_conv_weight(params["conv3_w"], W2), _conv_bias_row(params["conv3_b"], W2),
        _banded_conv_weight(params["conv4_w"], W2), _conv_bias_row(params["conv4_b"], W2),
        _banded_conv_weight(params["conv5_w"], W2), _conv_bias_row(params["conv5_b"], W2),
        _banded_conv_weight(params["conv6_w"], W2), _conv_bias_row(params["conv6_b"], W2),
        R1, C1, R2, C2,
        fw1, fb1, fw2, fb2,
    )

    def const_spec(a):
        z = (0,) * a.ndim
        return pl.BlockSpec(a.shape, lambda n, z=z: z)

    in_specs = [pl.BlockSpec((bb, H1, W1 * Cin), lambda n: (n, 0, 0))]
    in_specs += [const_spec(a) for a in inputs[1:]]

    kern = functools.partial(_fused_forward_kernel, Bb=bb, H1=H1, W1=W1, Hf=Hf)

    out = pl.pallas_call(
        kern,
        out_shape=jax.ShapeDtypeStruct((steps, bb, classes), jnp.float32),
        grid_spec=pltpu.PrefetchScalarGridSpec(
            num_scalar_prefetch=0,
            grid=(steps,),
            in_specs=in_specs,
            out_specs=pl.BlockSpec((1, bb, classes), lambda n: (n, 0, 0)),
            scratch_shapes=[
                pltpu.VMEM((bb, H1 + 2, W1 * Cin), jnp.float32),   # p1
                pltpu.VMEM((bb, H1 + 2, W1 * 6), jnp.float32),     # p2
                pltpu.VMEM((bb, H2 + 2, W2 * 6), jnp.float32),     # p3
                pltpu.VMEM((bb, H2 + 2, W2 * 12), jnp.float32),    # p4
                pltpu.VMEM((bb, H2 + 2, W2 * 12), jnp.float32),    # p5
                pltpu.VMEM((bb, H2 + 2, W2 * 12), jnp.float32),    # p6
                pltpu.VMEM((Hf * bb, Wf * 12), jnp.float32),       # feat
            ]),
        compiler_params=pltpu.CompilerParams(
            dimension_semantics=("parallel",)),
    )(*inputs)
    return out.reshape(N, classes)


# ----------------------------------------------------------------------------
# Parameters + pure-JAX reference (same math as the PyTorch module).
# ----------------------------------------------------------------------------
def init_params(key, in_channels=3, classes=2, image_size=(16, 16)):
    in_features = (image_size[0] // 2 // 2) * (image_size[1] // 2 // 2) * 12
    conv_specs = {"conv1": (6, in_channels), "conv2": (6, 6),
                  "conv3": (12, 6), "conv4": (12, 12),
                  "conv5": (12, 12), "conv6": (12, 12)}
    params = {}
    for i, (name, (cout, cin)) in enumerate(conv_specs.items()):
        kw = jax.random.fold_in(key, 2 * i)
        kb = jax.random.fold_in(key, 2 * i + 1)
        w_oihw = 0.1 * jax.random.normal(kw, (cout, cin, 3, 3), jnp.float32)
        params[name + "_w"] = jnp.transpose(w_oihw, (2, 3, 1, 0))   # OIHW -> HWIO
        params[name + "_b"] = 0.1 * jax.random.normal(kb, (cout,), jnp.float32)
    fc_specs = {"fc1": (in_features, 100), "fc2": (100, classes)}
    for j, (name, (fin, fout)) in enumerate(fc_specs.items()):
        kw = jax.random.fold_in(key, 100 + 2 * j)
        kb = jax.random.fold_in(key, 101 + 2 * j)
        w_oi = 0.1 * jax.random.normal(kw, (fout, fin), jnp.float32)
        params[name + "_w"] = jnp.transpose(w_oi)                   # (in, out)
        params[name + "_b"] = 0.1 * jax.random.normal(kb, (fout,), jnp.float32)
    return params


def reference_forward(x_nchw, params):
    def conv(x, w_hwio, b, relu):
        y = jax.lax.conv_general_dilated(
            x, w_hwio, window_strides=(1, 1), padding=((1, 1), (1, 1)),
            dimension_numbers=("NCHW", "HWIO", "NCHW"),
            precision=jax.lax.Precision.HIGHEST)
        y = y + b[None, :, None, None]
        return jnp.maximum(y, 0.0) if relu else y

    def pool(x):
        return jax.lax.reduce_window(x, -jnp.inf, jax.lax.max,
                                     (1, 1, 2, 2), (1, 1, 2, 2), "VALID")

    x = conv(x_nchw, params["conv1_w"], params["conv1_b"], False)
    x = conv(x, params["conv2_w"], params["conv2_b"], True)
    x = pool(x)
    x = conv(x, params["conv3_w"], params["conv3_b"], False)
    x = conv(x, params["conv4_w"], params["conv4_b"], True)
    x = conv(x, params["conv5_w"], params["conv5_b"], False)
    x = conv(x, params["conv6_w"], params["conv6_b"], True)
    x = pool(x)
    x = x.reshape(x.shape[0], -1)                        # NCHW channel-major flatten
    x = jnp.maximum(x @ params["fc1_w"] + params["fc1_b"], 0.0)
    x = x @ params["fc2_w"] + params["fc2_b"]
    return x


if __name__ == "__main__":
    key = jax.random.PRNGKey(0)
    in_channels, classes, image_size = 3, 2, (16, 16)    # small, pool-friendly size
    N = 4                                                # 2 images/step x 2 grid steps
    params = init_params(jax.random.fold_in(key, 1), in_channels, classes, image_size)
    x = jax.random.normal(jax.random.fold_in(key, 2),
                          (N, in_channels, image_size[0], image_size[1]), jnp.float32)

    fwd = jax.jit(class_model_forward)
    out = jax.block_until_ready(fwd(x, params))
    ref = jax.block_until_ready(reference_forward(x, params))

    assert out.shape == (N, classes), out.shape
    err = float(jnp.max(jnp.abs(out - ref)))
    assert err < 5e-2, f"max abs err {err}"
    print("KERNEL_OK")
</pallas_src>

<mosaic_0001>
module attributes {stable_mosaic.version = 11 : i64} {
  func.func @_fused_forward_kernel(%arg0: i32, %arg1: memref<2x16x48xf32, #tpu.memory_space<vmem>>, %arg2: memref<3x48x96xf32, #tpu.memory_space<vmem>>, %arg3: memref<1x96xf32, #tpu.memory_space<vmem>>, %arg4: memref<3x96x96xf32, #tpu.memory_space<vmem>>, %arg5: memref<1x96xf32, #tpu.memory_space<vmem>>, %arg6: memref<3x48x96xf32, #tpu.memory_space<vmem>>, %arg7: memref<1x96xf32, #tpu.memory_space<vmem>>, %arg8: memref<3x96x96xf32, #tpu.memory_space<vmem>>, %arg9: memref<1x96xf32, #tpu.memory_space<vmem>>, %arg10: memref<3x96x96xf32, #tpu.memory_space<vmem>>, %arg11: memref<1x96xf32, #tpu.memory_space<vmem>>, %arg12: memref<3x96x96xf32, #tpu.memory_space<vmem>>, %arg13: memref<1x96xf32, #tpu.memory_space<vmem>>, %arg14: memref<2x16x32xf32, #tpu.memory_space<vmem>>, %arg15: memref<2x96x48xf32, #tpu.memory_space<vmem>>, %arg16: memref<2x8x16xf32, #tpu.memory_space<vmem>>, %arg17: memref<2x96x48xf32, #tpu.memory_space<vmem>>, %arg18: memref<4x48x100xf32, #tpu.memory_space<vmem>>, %arg19: memref<1x100xf32, #tpu.memory_space<vmem>>, %arg20: memref<100x2xf32, #tpu.memory_space<vmem>>, %arg21: memref<1x2xf32, #tpu.memory_space<vmem>>, %arg22: memref<1x2x2xf32, #tpu.memory_space<vmem>>, %arg23: memref<2x18x48xf32, #tpu.memory_space<vmem>>, %arg24: memref<2x18x96xf32, #tpu.memory_space<vmem>>, %arg25: memref<2x10x48xf32, #tpu.memory_space<vmem>>, %arg26: memref<2x10x96xf32, #tpu.memory_space<vmem>>, %arg27: memref<2x10x96xf32, #tpu.memory_space<vmem>>, %arg28: memref<2x10x96xf32, #tpu.memory_space<vmem>>, %arg29: memref<8x48xf32, #tpu.memory_space<vmem>>) attributes {dimension_semantics = [#tpu.dimension_semantics<parallel>], iteration_bounds = array<i64: 2>, scalar_prefetch = 0 : i64, scratch_operands = 7 : i64, tpu.core_type = #tpu.core_type<tc>, window_params = [{transform_indices = @transform_0, window_bounds = array<i64: 2, 16, 48>}, {pipeline_mode = #tpu.pipeline_mode<synchronous>, transform_indices = @transform_1, window_bounds = array<i64: 3, 48, 96>}, {pipeline_mode = #tpu.pipeline_mode<synchronous>, transform_indices = @transform_2, window_bounds = array<i64: 1, 96>}, {pipeline_mode = #tpu.pipeline_mode<synchronous>, transform_indices = @transform_3, window_bounds = array<i64: 3, 96, 96>}, {pipeline_mode = #tpu.pipeline_mode<synchronous>, transform_indices = @transform_4, window_bounds = array<i64: 1, 96>}, {pipeline_mode = #tpu.pipeline_mode<synchronous>, transform_indices = @transform_5, window_bounds = array<i64: 3, 48, 96>}, {pipeline_mode = #tpu.pipeline_mode<synchronous>, transform_indices = @transform_6, window_bounds = array<i64: 1, 96>}, {pipeline_mode = #tpu.pipeline_mode<synchronous>, transform_indices = @transform_7, window_bounds = array<i64: 3, 96, 96>}, {pipeline_mode = #tpu.pipeline_mode<synchronous>, transform_indices = @transform_8, window_bounds = array<i64: 1, 96>}, {pipeline_mode = #tpu.pipeline_mode<synchronous>, transform_indices = @transform_9, window_bounds = array<i64: 3, 96, 96>}, {pipeline_mode = #tpu.pipeline_mode<synchronous>, transform_indices = @transform_10, window_bounds = array<i64: 1, 96>}, {pipeline_mode = #tpu.pipeline_mode<synchronous>, transform_indices = @transform_11, window_bounds = array<i64: 3, 96, 96>}, {pipeline_mode = #tpu.pipeline_mode<synchronous>, transform_indices = @transform_12, window_bounds = array<i64: 1, 96>}, {pipeline_mode = #tpu.pipeline_mode<synchronous>, transform_indices = @transform_13, window_bounds = array<i64: 2, 16, 32>}, {pipeline_mode = #tpu.pipeline_mode<synchronous>, transform_indices = @transform_14, window_bounds = array<i64: 2, 96, 48>}, {pipeline_mode = #tpu.pipeline_mode<synchronous>, transform_indices = @transform_15, window_bounds = array<i64: 2, 8, 16>}, {pipeline_mode = #tpu.pipeline_mode<synchronous>, transform_indices = @transform_16, window_bounds = array<i64: 2, 96, 48>}, {pipeline_mode = #tpu.pipeline_mode<synchronous>, transform_indices = @transform_17, window_bounds = array<i64: 4, 48, 100>}, {pipeline_mode = #tpu.pipeline_mode<synchronous>, transform_indices = @transform_18, window_bounds = array<i64: 1, 100>}, {pipeline_mode = #tpu.pipeline_mode<synchronous>, transform_indices = @transform_19, window_bounds = array<i64: 100, 2>}, {pipeline_mode = #tpu.pipeline_mode<synchronous>, transform_indices = @transform_20, window_bounds = array<i64: 1, 2>}, {transform_indices = @transform_21, window_bounds = array<i64: 1, 2, 2>}]} {
    %cst = arith.constant 0.000000e+00 : f32
    %0 = vector.broadcast %cst : f32 to vector<2x1x48xf32>
    %c0 = arith.constant 0 : index
    %c0_0 = arith.constant 0 : index
    %c0_1 = arith.constant 0 : index
    %1 = vector.load %arg23[%c0, %c0_0, %c0_1] : memref<2x18x48xf32, #tpu.memory_space<vmem>>, vector<2x1x48xf32>
    tpu.vector_store %arg23[%c0, %c0_0, %c0_1], %0 {strides = array<i32>} : memref<2x18x48xf32, #tpu.memory_space<vmem>>, vector<2x1x48xf32>,
    %c0_2 = arith.constant 0 : index
    %c17 = arith.constant 17 : index
    %c0_3 = arith.constant 0 : index
    %2 = vector.load %arg23[%c0_2, %c17, %c0_3] : memref<2x18x48xf32, #tpu.memory_space<vmem>>, vector<2x1x48xf32>
    tpu.vector_store %arg23[%c0_2, %c17, %c0_3], %0 {strides = array<i32>} : memref<2x18x48xf32, #tpu.memory_space<vmem>>, vector<2x1x48xf32>,
    %cst_4 = arith.constant 0.000000e+00 : f32
    %3 = vector.broadcast %cst_4 : f32 to vector<2x1x96xf32>
    %c0_5 = arith.constant 0 : index
    %c0_6 = arith.constant 0 : index
    %c0_7 = arith.constant 0 : index
    %4 = vector.load %arg24[%c0_5, %c0_6, %c0_7] : memref<2x18x96xf32, #tpu.memory_space<vmem>>, vector<2x1x96xf32>
    tpu.vector_store %arg24[%c0_5, %c0_6, %c0_7], %3 {strides = array<i32>} : memref<2x18x96xf32, #tpu.memory_space<vmem>>, vector<2x1x96xf32>,
    %c0_8 = arith.constant 0 : index
    %c17_9 = arith.constant 17 : index
    %c0_10 = arith.constant 0 : index
    %5 = vector.load %arg24[%c0_8, %c17_9, %c0_10] : memref<2x18x96xf32, #tpu.memory_space<vmem>>, vector<2x1x96xf32>
    tpu.vector_store %arg24[%c0_8, %c17_9, %c0_10], %3 {strides = array<i32>} : memref<2x18x96xf32, #tpu.memory_space<vmem>>, vector<2x1x96xf32>,
    %cst_11 = arith.constant 0.000000e+00 : f32
    %6 = vector.broadcast %cst_11 : f32 to vector<2x1x48xf32>
    %c0_12 = arith.constant 0 : index
    %c0_13 = arith.constant 0 : index
    %c0_14 = arith.constant 0 : index
    %7 = vector.load %arg25[%c0_12, %c0_13, %c0_14] : memref<2x10x48xf32, #tpu.memory_space<vmem>>, vector<2x1x48xf32>
    tpu.vector_store %arg25[%c0_12, %c0_13, %c0_14], %6 {strides = array<i32>} : memref<2x10x48xf32, #tpu.memory_space<vmem>>, vector<2x1x48xf32>,
    %c0_15 = arith.constant 0 : index
    %c9 = arith.constant 9 : index
    %c0_16 = arith.constant 0 : index
    %8 = vector.load %arg25[%c0_15, %c9, %c0_16] : memref<2x10x48xf32, #tpu.memory_space<vmem>>, vector<2x1x48xf32>
    tpu.vector_store %arg25[%c0_15, %c9, %c0_16], %6 {strides = array<i32>} : memref<2x10x48xf32, #tpu.memory_space<vmem>>, vector<2x1x48xf32>,
    %cst_17 = arith.constant 0.000000e+00 : f32
    %9 = vector.broadcast %cst_17 : f32 to vector<2x1x96xf32>
    %c0_18 = arith.constant 0 : index
    %c0_19 = arith.constant 0 : index
    %c0_20 = arith.constant 0 : index
    %10 = vector.load %arg26[%c0_18, %c0_19, %c0_20] : memref<2x10x96xf32, #tpu.memory_space<vmem>>, vector<2x1x96xf32>
    tpu.vector_store %arg26[%c0_18, %c0_19, %c0_20], %9 {strides = array<i32>} : memref<2x10x96xf32, #tpu.memory_space<vmem>>, vector<2x1x96xf32>,
    %c0_21 = arith.constant 0 : index
    %c9_22 = arith.constant 9 : index
    %c0_23 = arith.constant 0 : index
    %11 = vector.load %arg26[%c0_21, %c9_22, %c0_23] : memref<2x10x96xf32, #tpu.memory_space<vmem>>, vector<2x1x96xf32>
    tpu.vector_store %arg26[%c0_21, %c9_22, %c0_23], %9 {strides = array<i32>} : memref<2x10x96xf32, #tpu.memory_space<vmem>>, vector<2x1x96xf32>,
    %cst_24 = arith.constant 0.000000e+00 : f32
    %12 = vector.broadcast %cst_24 : f32 to vector<2x1x96xf32>
    %c0_25 = arith.constant 0 : index
    %c0_26 = arith.constant 0 : index
    %c0_27 = arith.constant 0 : index
    %13 = vector.load %arg27[%c0_25, %c0_26, %c0_27] : memref<2x10x96xf32, #tpu.memory_space<vmem>>, vector<2x1x96xf32>
    tpu.vector_store %arg27[%c0_25, %c0_26, %c0_27], %12 {strides = array<i32>} : memref<2x10x96xf32, #tpu.memory_space<vmem>>, vector<2x1x96xf32>,
    %c0_28 = arith.constant 0 : index
    %c9_29 = arith.constant 9 : index
    %c0_30 = arith.constant 0 : index
    %14 = vector.load %arg27[%c0_28, %c9_29, %c0_30] : memref<2x10x96xf32, #tpu.memory_space<vmem>>, vector<2x1x96xf32>
    tpu.vector_store %arg27[%c0_28, %c9_29, %c0_30], %12 {strides = array<i32>} : memref<2x10x96xf32, #tpu.memory_space<vmem>>, vector<2x1x96xf32>,
    %cst_31 = arith.constant 0.000000e+00 : f32
    %15 = vector.broadcast %cst_31 : f32 to vector<2x1x96xf32>
    %c0_32 = arith.constant 0 : index
    %c0_33 = arith.constant 0 : index
    %c0_34 = arith.constant 0 : index
    %16 = vector.load %arg28[%c0_32, %c0_33, %c0_34] : memref<2x10x96xf32, #tpu.memory_space<vmem>>, vector<2x1x96xf32>
    tpu.vector_store %arg28[%c0_32, %c0_33, %c0_34], %15 {strides = array<i32>} : memref<2x10x96xf32, #tpu.memory_space<vmem>>, vector<2x1x96xf32>,
    %c0_35 = arith.constant 0 : index
    %c9_36 = arith.constant 9 : index
    %c0_37 = arith.constant 0 : index
    %17 = vector.load %arg28[%c0_35, %c9_36, %c0_37] : memref<2x10x96xf32, #tpu.memory_space<vmem>>, vector<2x1x96xf32>
    tpu.vector_store %arg28[%c0_35, %c9_36, %c0_37], %15 {strides = array<i32>} : memref<2x10x96xf32, #tpu.memory_space<vmem>>, vector<2x1x96xf32>,
    %c0_38 = arith.constant 0 : index
    %c0_39 = arith.constant 0 : index
    %c0_40 = arith.constant 0 : index
    %18 = vector.load %arg1[%c0_38, %c0_39, %c0_40] : memref<2x16x48xf32, #tpu.memory_space<vmem>>, vector<2x16x48xf32>
    %c0_41 = arith.constant 0 : index
    %c1 = arith.constant 1 : index
    %c0_42 = arith.constant 0 : index
    %19 = vector.load %arg23[%c0_41, %c1, %c0_42] : memref<2x18x48xf32, #tpu.memory_space<vmem>>, vector<2x16x48xf32>
    tpu.vector_store %arg23[%c0_41, %c1, %c0_42], %18 {strides = array<i32>} : memref<2x18x48xf32, #tpu.memory_space<vmem>>, vector<2x16x48xf32>,
    %cst_43 = arith.constant 0.000000e+00 : f32
    %20 = vector.broadcast %cst_43 : f32 to vector<32x96xf32>
    %c0_44 = arith.constant 0 : index
    %c0_45 = arith.constant 0 : index
    %c0_46 = arith.constant 0 : index
    %21 = vector.load %arg23[%c0_44, %c0_45, %c0_46] : memref<2x18x48xf32, #tpu.memory_space<vmem>>, vector<2x16x48xf32>
    %22 = vector.shape_cast %21 : vector<2x16x48xf32> to vector<32x48xf32>
    %c0_47 = arith.constant 0 : index
    %c0_48 = arith.constant 0 : index
    %c0_49 = arith.constant 0 : index
    %23 = vector.load %arg2[%c0_47, %c0_48, %c0_49] : memref<3x48x96xf32, #tpu.memory_space<vmem>>, vector<1x48x96xf32>
    %24 = vector.shape_cast %23 : vector<1x48x96xf32> to vector<48x96xf32>
    %cst_50 = arith.constant dense<0.000000e+00> : vector<32x96xf32>
    %25 = tpu.matmul %22, %24, %cst_50 {dimension_numbers = #tpu.dot_dimension_numbers<[1], [0], [0], [1], [0, 0, 1, 1], [], []>} : vector<32x48xf32>, vector<48x96xf32>, vector<32x96xf32> -> vector<32x96xf32>
    %26 = arith.addf %20, %25 : vector<32x96xf32>
    %c0_51 = arith.constant 0 : index
    %c1_52 = arith.constant 1 : index
    %c0_53 = arith.constant 0 : index
    %27 = vector.load %arg23[%c0_51, %c1_52, %c0_53] : memref<2x18x48xf32, #tpu.memory_space<vmem>>, vector<2x16x48xf32>
    %28 = vector.shape_cast %27 : vector<2x16x48xf32> to vector<32x48xf32>
    %c1_54 = arith.constant 1 : index
    %c0_55 = arith.constant 0 : index
    %c0_56 = arith.constant 0 : index
    %29 = vector.load %arg2[%c1_54, %c0_55, %c0_56] : memref<3x48x96xf32, #tpu.memory_space<vmem>>, vector<1x48x96xf32>
    %30 = vector.shape_cast %29 : vector<1x48x96xf32> to vector<48x96xf32>
    %cst_57 = arith.constant dense<0.000000e+00> : vector<32x96xf32>
    %31 = tpu.matmul %28, %30, %cst_57 {dimension_numbers = #tpu.dot_dimension_numbers<[1], [0], [0], [1], [0, 0, 1, 1], [], []>} : vector<32x48xf32>, vector<48x96xf32>, vector<32x96xf32> -> vector<32x96xf32>
    %32 = arith.addf %26, %31 : vector<32x96xf32>
    %c0_58 = arith.constant 0 : index
    %c2 = arith.constant 2 : index
    %c0_59 = arith.constant 0 : index
    %33 = vector.load %arg23[%c0_58, %c2, %c0_59] : memref<2x18x48xf32, #tpu.memory_space<vmem>>, vector<2x16x48xf32>
    %34 = vector.shape_cast %33 : vector<2x16x48xf32> to vector<32x48xf32>
    %c2_60 = arith.constant 2 : index
    %c0_61 = arith.constant 0 : index
    %c0_62 = arith.constant 0 : index
    %35 = vector.load %arg2[%c2_60, %c0_61, %c0_62] : memref<3x48x96xf32, #tpu.memory_space<vmem>>, vector<1x48x96xf32>
    %36 = vector.shape_cast %35 : vector<1x48x96xf32> to vector<48x96xf32>
    %cst_63 = arith.constant dense<0.000000e+00> : vector<32x96xf32>
    %37 = tpu.matmul %34, %36, %cst_63 {dimension_numbers = #tpu.dot_dimension_numbers<[1], [0], [0], [1], [0, 0, 1, 1], [], []>} : vector<32x48xf32>, vector<48x96xf32>, vector<32x96xf32> -> vector<32x96xf32>
    %38 = arith.addf %32, %37 : vector<32x96xf32>
    %c0_64 = arith.constant 0 : index
    %c0_65 = arith.constant 0 : index
    %39 = vector.load %arg3[%c0_64, %c0_65] : memref<1x96xf32, #tpu.memory_space<vmem>>, vector<1x96xf32>
    %40 = vector.broadcast %39 : vector<1x96xf32> to vector<32x96xf32>
    %41 = arith.addf %38, %40 : vector<32x96xf32>
    %42 = vector.shape_cast %41 : vector<32x96xf32> to vector<2x16x96xf32>
    %c0_66 = arith.constant 0 : index
    %c1_67 = arith.constant 1 : index
    %c0_68 = arith.constant 0 : index
    %43 = vector.load %arg24[%c0_66, %c1_67, %c0_68] : memref<2x18x96xf32, #tpu.memory_space<vmem>>, vector<2x16x96xf32>
    tpu.vector_store %arg24[%c0_66, %c1_67, %c0_68], %42 {strides = array<i32>} : memref<2x18x96xf32, #tpu.memory_space<vmem>>, vector<2x16x96xf32>,
    %cst_69 = arith.constant 0.000000e+00 : f32
    %44 = vector.broadcast %cst_69 : f32 to vector<32x96xf32>
    %c0_70 = arith.constant 0 : index
    %c0_71 = arith.constant 0 : index
    %c0_72 = arith.constant 0 : index
    %45 = vector.load %arg24[%c0_70, %c0_71, %c0_72] : memref<2x18x96xf32, #tpu.memory_space<vmem>>, vector<2x16x96xf32>
    %46 = vector.shape_cast %45 : vector<2x16x96xf32> to vector<32x96xf32>
    %c0_73 = arith.constant 0 : index
    %c0_74 = arith.constant 0 : index
    %c0_75 = arith.constant 0 : index
    %47 = vector.load %arg4[%c0_73, %c0_74, %c0_75] : memref<3x96x96xf32, #tpu.memory_space<vmem>>, vector<1x96x96xf32>
    %48 = vector.shape_cast %47 : vector<1x96x96xf32> to vector<96x96xf32>
    %cst_76 = arith.constant dense<0.000000e+00> : vector<32x96xf32>
    %49 = tpu.matmul %46, %48, %cst_76 {dimension_numbers = #tpu.dot_dimension_numbers<[1], [0], [0], [1], [0, 0, 1, 1], [], []>} : vector<32x96xf32>, vector<96x96xf32>, vector<32x96xf32> -> vector<32x96xf32>
    %50 = arith.addf %44, %49 : vector<32x96xf32>
    %c0_77 = arith.constant 0 : index
    %c1_78 = arith.constant 1 : index
    %c0_79 = arith.constant 0 : index
    %51 = vector.load %arg24[%c0_77, %c1_78, %c0_79] : memref<2x18x96xf32, #tpu.memory_space<vmem>>, vector<2x16x96xf32>
    %52 = vector.shape_cast %51 : vector<2x16x96xf32> to vector<32x96xf32>
    %c1_80 = arith.constant 1 : index
    %c0_81 = arith.constant 0 : index
    %c0_82 = arith.constant 0 : index
    %53 = vector.load %arg4[%c1_80, %c0_81, %c0_82] : memref<3x96x96xf32, #tpu.memory_space<vmem>>, vector<1x96x96xf32>
    %54 = vector.shape_cast %53 : vector<1x96x96xf32> to vector<96x96xf32>
    %cst_83 = arith.constant dense<0.000000e+00> : vector<32x96xf32>
    %55 = tpu.matmul %52, %54, %cst_83 {dimension_numbers = #tpu.dot_dimension_numbers<[1], [0], [0], [1], [0, 0, 1, 1], [], []>} : vector<32x96xf32>, vector<96x96xf32>, vector<32x96xf32> -> vector<32x96xf32>
    %56 = arith.addf %50, %55 : vector<32x96xf32>
    %c0_84 = arith.constant 0 : index
    %c2_85 = arith.constant 2 : index
    %c0_86 = arith.constant 0 : index
    %57 = vector.load %arg24[%c0_84, %c2_85, %c0_86] : memref<2x18x96xf32, #tpu.memory_space<vmem>>, vector<2x16x96xf32>
    %58 = vector.shape_cast %57 : vector<2x16x96xf32> to vector<32x96xf32>
    %c2_87 = arith.constant 2 : index
    %c0_88 = arith.constant 0 : index
    %c0_89 = arith.constant 0 : index
    %59 = vector.load %arg4[%c2_87, %c0_88, %c0_89] : memref<3x96x96xf32, #tpu.memory_space<vmem>>, vector<1x96x96xf32>
    %60 = vector.shape_cast %59 : vector<1x96x96xf32> to vector<96x96xf32>
    %cst_90 = arith.constant dense<0.000000e+00> : vector<32x96xf32>
    %61 = tpu.matmul %58, %60, %cst_90 {dimension_numbers = #tpu.dot_dimension_numbers<[1], [0], [0], [1], [0, 0, 1, 1], [], []>} : vector<32x96xf32>, vector<96x96xf32>, vector<32x96xf32> -> vector<32x96xf32>
    %62 = arith.addf %56, %61 : vector<32x96xf32>
    %c0_91 = arith.constant 0 : index
    %c0_92 = arith.constant 0 : index
    %63 = vector.load %arg5[%c0_91, %c0_92] : memref<1x96xf32, #tpu.memory_space<vmem>>, vector<1x96xf32>
    %64 = vector.broadcast %63 : vector<1x96xf32> to vector<32x96xf32>
    %65 = arith.addf %62, %64 : vector<32x96xf32>
    %cst_93 = arith.constant 0.000000e+00 : f32
    %66 = vector.broadcast %cst_93 : f32 to vector<32x96xf32>
    %67 = arith.maximumf %65, %66 : vector<32x96xf32>
    %c0_94 = arith.constant 0 : index
    %c0_95 = arith.constant 0 : index
    %c0_96 = arith.constant 0 : index
    %68 = vector.load %arg14[%c0_94, %c0_95, %c0_96] : memref<2x16x32xf32, #tpu.memory_space<vmem>>, vector<1x16x32xf32>
    %69 = vector.shape_cast %68 : vector<1x16x32xf32> to vector<16x32xf32>
    %cst_97 = arith.constant dense<0.000000e+00> : vector<16x96xf32>
    %70 = tpu.matmul %69, %67, %cst_97 {dimension_numbers = #tpu.dot_dimension_numbers<[1], [0], [0], [1], [0, 0, 1, 1], [], []>} : vector<16x32xf32>, vector<32x96xf32>, vector<16x96xf32> -> vector<16x96xf32>
    %c1_98 = arith.constant 1 : index
    %c0_99 = arith.constant 0 : index
    %c0_100 = arith.constant 0 : index
    %71 = vector.load %arg14[%c1_98, %c0_99, %c0_100] : memref<2x16x32xf32, #tpu.memory_space<vmem>>, vector<1x16x32xf32>
    %72 = vector.shape_cast %71 : vector<1x16x32xf32> to vector<16x32xf32>
    %cst_101 = arith.constant dense<0.000000e+00> : vector<16x96xf32>
    %73 = tpu.matmul %72, %67, %cst_101 {dimension_numbers = #tpu.dot_dimension_numbers<[1], [0], [0], [1], [0, 0, 1, 1], [], []>} : vector<16x32xf32>, vector<32x96xf32>, vector<16x96xf32> -> vector<16x96xf32>
    %74 = arith.maximumf %70, %73 : vector<16x96xf32>
    %c0_102 = arith.constant 0 : index
    %c0_103 = arith.constant 0 : index
    %c0_104 = arith.constant 0 : index
    %75 = vector.load %arg15[%c0_102, %c0_103, %c0_104] : memref<2x96x48xf32, #tpu.memory_space<vmem>>, vector<1x96x48xf32>
    %76 = vector.shape_cast %75 : vector<1x96x48xf32> to vector<96x48xf32>
    %cst_105 = arith.constant dense<0.000000e+00> : vector<16x48xf32>
    %77 = tpu.matmul %74, %76, %cst_105 {dimension_numbers = #tpu.dot_dimension_numbers<[1], [0], [0], [1], [0, 0, 1, 1], [], []>} : vector<16x96xf32>, vector<96x48xf32>, vector<16x48xf32> -> vector<16x48xf32>
    %c1_106 = arith.constant 1 : index
    %c0_107 = arith.constant 0 : index
    %c0_108 = arith.constant 0 : index
    %78 = vector.load %arg15[%c1_106, %c0_107, %c0_108] : memref<2x96x48xf32, #tpu.memory_space<vmem>>, vector<1x96x48xf32>
    %79 = vector.shape_cast %78 : vector<1x96x48xf32> to vector<96x48xf32>
    %cst_109 = arith.constant dense<0.000000e+00> : vector<16x48xf32>
    %80 = tpu.matmul %74, %79, %cst_109 {dimension_numbers = #tpu.dot_dimension_numbers<[1], [0], [0], [1], [0, 0, 1, 1], [], []>} : vector<16x96xf32>, vector<96x48xf32>, vector<16x48xf32> -> vector<16x48xf32>
    %81 = arith.maximumf %77, %80 : vector<16x48xf32>
    %82 = vector.shape_cast %81 : vector<16x48xf32> to vector<2x8x48xf32>
    %c0_110 = arith.constant 0 : index
    %c1_111 = arith.constant 1 : index
    %c0_112 = arith.constant 0 : index
    %83 = vector.load %arg25[%c0_110, %c1_111, %c0_112] : memref<2x10x48xf32, #tpu.memory_space<vmem>>, vector<2x8x48xf32>
    tpu.vector_store %arg25[%c0_110, %c1_111, %c0_112], %82 {strides = array<i32>} : memref<2x10x48xf32, #tpu.memory_space<vmem>>, vector<2x8x48xf32>,
    %cst_113 = arith.constant 0.000000e+00 : f32
    %84 = vector.broadcast %cst_113 : f32 to vector<16x96xf32>
    %c0_114 = arith.constant 0 : index
    %c0_115 = arith.constant 0 : index
    %c0_116 = arith.constant 0 : index
    %85 = vector.load %arg25[%c0_114, %c0_115, %c0_116] : memref<2x10x48xf32, #tpu.memory_space<vmem>>, vector<2x8x48xf32>
    %86 = vector.shape_cast %85 : vector<2x8x48xf32> to vector<16x48xf32>
    %c0_117 = arith.constant 0 : index
    %c0_118 = arith.constant 0 : index
    %c0_119 = arith.constant 0 : index
    %87 = vector.load %arg6[%c0_117, %c0_118, %c0_119] : memref<3x48x96xf32, #tpu.memory_space<vmem>>, vector<1x48x96xf32>
    %88 = vector.shape_cast %87 : vector<1x48x96xf32> to vector<48x96xf32>
    %cst_120 = arith.constant dense<0.000000e+00> : vector<16x96xf32>
    %89 = tpu.matmul %86, %88, %cst_120 {dimension_numbers = #tpu.dot_dimension_numbers<[1], [0], [0], [1], [0, 0, 1, 1], [], []>} : vector<16x48xf32>, vector<48x96xf32>, vector<16x96xf32> -> vector<16x96xf32>
    %90 = arith.addf %84, %89 : vector<16x96xf32>
    %c0_121 = arith.constant 0 : index
    %c1_122 = arith.constant 1 : index
    %c0_123 = arith.constant 0 : index
    %91 = vector.load %arg25[%c0_121, %c1_122, %c0_123] : memref<2x10x48xf32, #tpu.memory_space<vmem>>, vector<2x8x48xf32>
    %92 = vector.shape_cast %91 : vector<2x8x48xf32> to vector<16x48xf32>
    %c1_124 = arith.constant 1 : index
    %c0_125 = arith.constant 0 : index
    %c0_126 = arith.constant 0 : index
    %93 = vector.load %arg6[%c1_124, %c0_125, %c0_126] : memref<3x48x96xf32, #tpu.memory_space<vmem>>, vector<1x48x96xf32>
    %94 = vector.shape_cast %93 : vector<1x48x96xf32> to vector<48x96xf32>
    %cst_127 = arith.constant dense<0.000000e+00> : vector<16x96xf32>
    %95 = tpu.matmul %92, %94, %cst_127 {dimension_numbers = #tpu.dot_dimension_numbers<[1], [0], [0], [1], [0, 0, 1, 1], [], []>} : vector<16x48xf32>, vector<48x96xf32>, vector<16x96xf32> -> vector<16x96xf32>
    %96 = arith.addf %90, %95 : vector<16x96xf32>
    %c0_128 = arith.constant 0 : index
    %c2_129 = arith.constant 2 : index
    %c0_130 = arith.constant 0 : index
    %97 = vector.load %arg25[%c0_128, %c2_129, %c0_130] : memref<2x10x48xf32, #tpu.memory_space<vmem>>, vector<2x8x48xf32>
    %98 = vector.shape_cast %97 : vector<2x8x48xf32> to vector<16x48xf32>
    %c2_131 = arith.constant 2 : index
    %c0_132 = arith.constant 0 : index
    %c0_133 = arith.constant 0 : index
    %99 = vector.load %arg6[%c2_131, %c0_132, %c0_133] : memref<3x48x96xf32, #tpu.memory_space<vmem>>, vector<1x48x96xf32>
    %100 = vector.shape_cast %99 : vector<1x48x96xf32> to vector<48x96xf32>
    %cst_134 = arith.constant dense<0.000000e+00> : vector<16x96xf32>
    %101 = tpu.matmul %98, %100, %cst_134 {dimension_numbers = #tpu.dot_dimension_numbers<[1], [0], [0], [1], [0, 0, 1, 1], [], []>} : vector<16x48xf32>, vector<48x96xf32>, vector<16x96xf32> -> vector<16x96xf32>
    %102 = arith.addf %96, %101 : vector<16x96xf32>
    %c0_135 = arith.constant 0 : index
    %c0_136 = arith.constant 0 : index
    %103 = vector.load %arg7[%c0_135, %c0_136] : memref<1x96xf32, #tpu.memory_space<vmem>>, vector<1x96xf32>
    %104 = vector.broadcast %103 : vector<1x96xf32> to vector<16x96xf32>
    %105 = arith.addf %102, %104 : vector<16x96xf32>
    %106 = vector.shape_cast %105 : vector<16x96xf32> to vector<2x8x96xf32>
    %c0_137 = arith.constant 0 : index
    %c1_138 = arith.constant 1 : index
    %c0_139 = arith.constant 0 : index
    %107 = vector.load %arg26[%c0_137, %c1_138, %c0_139] : memref<2x10x96xf32, #tpu.memory_space<vmem>>, vector<2x8x96xf32>
    tpu.vector_store %arg26[%c0_137, %c1_138, %c0_139], %106 {strides = array<i32>} : memref<2x10x96xf32, #tpu.memory_space<vmem>>, vector<2x8x96xf32>,
    %cst_140 = arith.constant 0.000000e+00 : f32
    %108 = vector.broadcast %cst_140 : f32 to vector<16x96xf32>
    %c0_141 = arith.constant 0 : index
    %c0_142 = arith.constant 0 : index
    %c0_143 = arith.constant 0 : index
    %109 = vector.load %arg26[%c0_141, %c0_142, %c0_143] : memref<2x10x96xf32, #tpu.memory_space<vmem>>, vector<2x8x96xf32>
    %110 = vector.shape_cast %109 : vector<2x8x96xf32> to vector<16x96xf32>
    %c0_144 = arith.constant 0 : index
    %c0_145 = arith.constant 0 : index
    %c0_146 = arith.constant 0 : index
    %111 = vector.load %arg8[%c0_144, %c0_145, %c0_146] : memref<3x96x96xf32, #tpu.memory_space<vmem>>, vector<1x96x96xf32>
    %112 = vector.shape_cast %111 : vector<1x96x96xf32> to vector<96x96xf32>
    %cst_147 = arith.constant dense<0.000000e+00> : vector<16x96xf32>
    %113 = tpu.matmul %110, %112, %cst_147 {dimension_numbers = #tpu.dot_dimension_numbers<[1], [0], [0], [1], [0, 0, 1, 1], [], []>} : vector<16x96xf32>, vector<96x96xf32>, vector<16x96xf32> -> vector<16x96xf32>
    %114 = arith.addf %108, %113 : vector<16x96xf32>
    %c0_148 = arith.constant 0 : index
    %c1_149 = arith.constant 1 : index
    %c0_150 = arith.constant 0 : index
    %115 = vector.load %arg26[%c0_148, %c1_149, %c0_150] : memref<2x10x96xf32, #tpu.memory_space<vmem>>, vector<2x8x96xf32>
    %116 = vector.shape_cast %115 : vector<2x8x96xf32> to vector<16x96xf32>
    %c1_151 = arith.constant 1 : index
    %c0_152 = arith.constant 0 : index
    %c0_153 = arith.constant 0 : index
    %117 = vector.load %arg8[%c1_151, %c0_152, %c0_153] : memref<3x96x96xf32, #tpu.memory_space<vmem>>, vector<1x96x96xf32>
    %118 = vector.shape_cast %117 : vector<1x96x96xf32> to vector<96x96xf32>
    %cst_154 = arith.constant dense<0.000000e+00> : vector<16x96xf32>
    %119 = tpu.matmul %116, %118, %cst_154 {dimension_numbers = #tpu.dot_dimension_numbers<[1], [0], [0], [1], [0, 0, 1, 1], [], []>} : vector<16x96xf32>, vector<96x96xf32>, vector<16x96xf32> -> vector<16x96xf32>
    %120 = arith.addf %114, %119 : vector<16x96xf32>
    %c0_155 = arith.constant 0 : index
    %c2_156 = arith.constant 2 : index
    %c0_157 = arith.constant 0 : index
    %121 = vector.load %arg26[%c0_155, %c2_156, %c0_157] : memref<2x10x96xf32, #tpu.memory_space<vmem>>, vector<2x8x96xf32>
    %122 = vector.shape_cast %121 : vector<2x8x96xf32> to vector<16x96xf32>
    %c2_158 = arith.constant 2 : index
    %c0_159 = arith.constant 0 : index
    %c0_160 = arith.constant 0 : index
    %123 = vector.load %arg8[%c2_158, %c0_159, %c0_160] : memref<3x96x96xf32, #tpu.memory_space<vmem>>, vector<1x96x96xf32>
    %124 = vector.shape_cast %123 : vector<1x96x96xf32> to vector<96x96xf32>
    %cst_161 = arith.constant dense<0.000000e+00> : vector<16x96xf32>
    %125 = tpu.matmul %122, %124, %cst_161 {dimension_numbers = #tpu.dot_dimension_numbers<[1], [0], [0], [1], [0, 0, 1, 1], [], []>} : vector<16x96xf32>, vector<96x96xf32>, vector<16x96xf32> -> vector<16x96xf32>
    %126 = arith.addf %120, %125 : vector<16x96xf32>
    %c0_162 = arith.constant 0 : index
    %c0_163 = arith.constant 0 : index
    %127 = vector.load %arg9[%c0_162, %c0_163] : memref<1x96xf32, #tpu.memory_space<vmem>>, vector<1x96xf32>
    %128 = vector.broadcast %127 : vector<1x96xf32> to vector<16x96xf32>
    %129 = arith.addf %126, %128 : vector<16x96xf32>
    %cst_164 = arith.constant 0.000000e+00 : f32
    %130 = vector.broadcast %cst_164 : f32 to vector<16x96xf32>
    %131 = arith.maximumf %129, %130 : vector<16x96xf32>
    %132 = vector.shape_cast %131 : vector<16x96xf32> to vector<2x8x96xf32>
    %c0_165 = arith.constant 0 : index
    %c1_166 = arith.constant 1 : index
    %c0_167 = arith.constant 0 : index
    %133 = vector.load %arg27[%c0_165, %c1_166, %c0_167] : memref<2x10x96xf32, #tpu.memory_space<vmem>>, vector<2x8x96xf32>
    tpu.vector_store %arg27[%c0_165, %c1_166, %c0_167], %132 {strides = array<i32>} : memref<2x10x96xf32, #tpu.memory_space<vmem>>, vector<2x8x96xf32>,
    %cst_168 = arith.constant 0.000000e+00 : f32
    %134 = vector.broadcast %cst_168 : f32 to vector<16x96xf32>
    %c0_169 = arith.constant 0 : index
    %c0_170 = arith.constant 0 : index
    %c0_171 = arith.constant 0 : index
    %135 = vector.load %arg27[%c0_169, %c0_170, %c0_171] : memref<2x10x96xf32, #tpu.memory_space<vmem>>, vector<2x8x96xf32>
    %136 = vector.shape_cast %135 : vector<2x8x96xf32> to vector<16x96xf32>
    %c0_172 = arith.constant 0 : index
    %c0_173 = arith.constant 0 : index
    %c0_174 = arith.constant 0 : index
    %137 = vector.load %arg10[%c0_172, %c0_173, %c0_174] : memref<3x96x96xf32, #tpu.memory_space<vmem>>, vector<1x96x96xf32>
    %138 = vector.shape_cast %137 : vector<1x96x96xf32> to vector<96x96xf32>
    %cst_175 = arith.constant dense<0.000000e+00> : vector<16x96xf32>
    %139 = tpu.matmul %136, %138, %cst_175 {dimension_numbers = #tpu.dot_dimension_numbers<[1], [0], [0], [1], [0, 0, 1, 1], [], []>} : vector<16x96xf32>, vector<96x96xf32>, vector<16x96xf32> -> vector<16x96xf32>
    %140 = arith.addf %134, %139 : vector<16x96xf32>
    %c0_176 = arith.constant 0 : index
    %c1_177 = arith.constant 1 : index
    %c0_178 = arith.constant 0 : index
    %141 = vector.load %arg27[%c0_176, %c1_177, %c0_178] : memref<2x10x96xf32, #tpu.memory_space<vmem>>, vector<2x8x96xf32>
    %142 = vector.shape_cast %141 : vector<2x8x96xf32> to vector<16x96xf32>
    %c1_179 = arith.constant 1 : index
    %c0_180 = arith.constant 0 : index
    %c0_181 = arith.constant 0 : index
    %143 = vector.load %arg10[%c1_179, %c0_180, %c0_181] : memref<3x96x96xf32, #tpu.memory_space<vmem>>, vector<1x96x96xf32>
    %144 = vector.shape_cast %143 : vector<1x96x96xf32> to vector<96x96xf32>
    %cst_182 = arith.constant dense<0.000000e+00> : vector<16x96xf32>
    %145 = tpu.matmul %142, %144, %cst_182 {dimension_numbers = #tpu.dot_dimension_numbers<[1], [0], [0], [1], [0, 0, 1, 1], [], []>} : vector<16x96xf32>, vector<96x96xf32>, vector<16x96xf32> -> vector<16x96xf32>
    %146 = arith.addf %140, %145 : vector<16x96xf32>
    %c0_183 = arith.constant 0 : index
    %c2_184 = arith.constant 2 : index
    %c0_185 = arith.constant 0 : index
    %147 = vector.load %arg27[%c0_183, %c2_184, %c0_185] : memref<2x10x96xf32, #tpu.memory_space<vmem>>, vector<2x8x96xf32>
    %148 = vector.shape_cast %147 : vector<2x8x96xf32> to vector<16x96xf32>
    %c2_186 = arith.constant 2 : index
    %c0_187 = arith.constant 0 : index
    %c0_188 = arith.constant 0 : index
    %149 = vector.load %arg10[%c2_186, %c0_187, %c0_188] : memref<3x96x96xf32, #tpu.memory_space<vmem>>, vector<1x96x96xf32>
    %150 = vector.shape_cast %149 : vector<1x96x96xf32> to vector<96x96xf32>
    %cst_189 = arith.constant dense<0.000000e+00> : vector<16x96xf32>
    %151 = tpu.matmul %148, %150, %cst_189 {dimension_numbers = #tpu.dot_dimension_numbers<[1], [0], [0], [1], [0, 0, 1, 1], [], []>} : vector<16x96xf32>, vector<96x96xf32>, vector<16x96xf32> -> vector<16x96xf32>
    %152 = arith.addf %146, %151 : vector<16x96xf32>
    %c0_190 = arith.constant 0 : index
    %c0_191 = arith.constant 0 : index
    %153 = vector.load %arg11[%c0_190, %c0_191] : memref<1x96xf32, #tpu.memory_space<vmem>>, vector<1x96xf32>
    %154 = vector.broadcast %153 : vector<1x96xf32> to vector<16x96xf32>
    %155 = arith.addf %152, %154 : vector<16x96xf32>
    %156 = vector.shape_cast %155 : vector<16x96xf32> to vector<2x8x96xf32>
    %c0_192 = arith.constant 0 : index
    %c1_193 = arith.constant 1 : index
    %c0_194 = arith.constant 0 : index
    %157 = vector.load %arg28[%c0_192, %c1_193, %c0_194] : memref<2x10x96xf32, #tpu.memory_space<vmem>>, vector<2x8x96xf32>
    tpu.vector_store %arg28[%c0_192, %c1_193, %c0_194], %156 {strides = array<i32>} : memref<2x10x96xf32, #tpu.memory_space<vmem>>, vector<2x8x96xf32>,
    %cst_195 = arith.constant 0.000000e+00 : f32
    %158 = vector.broadcast %cst_195 : f32 to vector<16x96xf32>
    %c0_196 = arith.constant 0 : index
    %c0_197 = arith.constant 0 : index
    %c0_198 = arith.constant 0 : index
    %159 = vector.load %arg28[%c0_196, %c0_197, %c0_198] : memref<2x10x96xf32, #tpu.memory_space<vmem>>, vector<2x8x96xf32>
    %160 = vector.shape_cast %159 : vector<2x8x96xf32> to vector<16x96xf32>
    %c0_199 = arith.constant 0 : index
    %c0_200 = arith.constant 0 : index
    %c0_201 = arith.constant 0 : index
    %161 = vector.load %arg12[%c0_199, %c0_200, %c0_201] : memref<3x96x96xf32, #tpu.memory_space<vmem>>, vector<1x96x96xf32>
    %162 = vector.shape_cast %161 : vector<1x96x96xf32> to vector<96x96xf32>
    %cst_202 = arith.constant dense<0.000000e+00> : vector<16x96xf32>
    %163 = tpu.matmul %160, %162, %cst_202 {dimension_numbers = #tpu.dot_dimension_numbers<[1], [0], [0], [1], [0, 0, 1, 1], [], []>} : vector<16x96xf32>, vector<96x96xf32>, vector<16x96xf32> -> vector<16x96xf32>
    %164 = arith.addf %158, %163 : vector<16x96xf32>
    %c0_203 = arith.constant 0 : index
    %c1_204 = arith.constant 1 : index
    %c0_205 = arith.constant 0 : index
    %165 = vector.load %arg28[%c0_203, %c1_204, %c0_205] : memref<2x10x96xf32, #tpu.memory_space<vmem>>, vector<2x8x96xf32>
    %166 = vector.shape_cast %165 : vector<2x8x96xf32> to vector<16x96xf32>
    %c1_206 = arith.constant 1 : index
    %c0_207 = arith.constant 0 : index
    %c0_208 = arith.constant 0 : index
    %167 = vector.load %arg12[%c1_206, %c0_207, %c0_208] : memref<3x96x96xf32, #tpu.memory_space<vmem>>, vector<1x96x96xf32>
    %168 = vector.shape_cast %167 : vector<1x96x96xf32> to vector<96x96xf32>
    %cst_209 = arith.constant dense<0.000000e+00> : vector<16x96xf32>
    %169 = tpu.matmul %166, %168, %cst_209 {dimension_numbers = #tpu.dot_dimension_numbers<[1], [0], [0], [1], [0, 0, 1, 1], [], []>} : vector<16x96xf32>, vector<96x96xf32>, vector<16x96xf32> -> vector<16x96xf32>
    %170 = arith.addf %164, %169 : vector<16x96xf32>
    %c0_210 = arith.constant 0 : index
    %c2_211 = arith.constant 2 : index
    %c0_212 = arith.constant 0 : index
    %171 = vector.load %arg28[%c0_210, %c2_211, %c0_212] : memref<2x10x96xf32, #tpu.memory_space<vmem>>, vector<2x8x96xf32>
    %172 = vector.shape_cast %171 : vector<2x8x96xf32> to vector<16x96xf32>
    %c2_213 = arith.constant 2 : index
    %c0_214 = arith.constant 0 : index
    %c0_215 = arith.constant 0 : index
    %173 = vector.load %arg12[%c2_213, %c0_214, %c0_215] : memref<3x96x96xf32, #tpu.memory_space<vmem>>, vector<1x96x96xf32>
    %174 = vector.shape_cast %173 : vector<1x96x96xf32> to vector<96x96xf32>
    %cst_216 = arith.constant dense<0.000000e+00> : vector<16x96xf32>
    %175 = tpu.matmul %172, %174, %cst_216 {dimension_numbers = #tpu.dot_dimension_numbers<[1], [0], [0], [1], [0, 0, 1, 1], [], []>} : vector<16x96xf32>, vector<96x96xf32>, vector<16x96xf32> -> vector<16x96xf32>
    %176 = arith.addf %170, %175 : vector<16x96xf32>
    %c0_217 = arith.constant 0 : index
    %c0_218 = arith.constant 0 : index
    %177 = vector.load %arg13[%c0_217, %c0_218] : memref<1x96xf32, #tpu.memory_space<vmem>>, vector<1x96xf32>
    %178 = vector.broadcast %177 : vector<1x96xf32> to vector<16x96xf32>
    %179 = arith.addf %176, %178 : vector<16x96xf32>
    %cst_219 = arith.constant 0.000000e+00 : f32
    %180 = vector.broadcast %cst_219 : f32 to vector<16x96xf32>
    %181 = arith.maximumf %179, %180 : vector<16x96xf32>
    %c0_220 = arith.constant 0 : index
    %c0_221 = arith.constant 0 : index
    %c0_222 = arith.constant 0 : index
    %182 = vector.load %arg16[%c0_220, %c0_221, %c0_222] : memref<2x8x16xf32, #tpu.memory_space<vmem>>, vector<1x8x16xf32>
    %183 = vector.shape_cast %182 : vector<1x8x16xf32> to vector<8x16xf32>
    %cst_223 = arith.constant dense<0.000000e+00> : vector<8x96xf32>
    %184 = tpu.matmul %183, %181, %cst_223 {dimension_numbers = #tpu.dot_dimension_numbers<[1], [0], [0], [1], [0, 0, 1, 1], [], []>} : vector<8x16xf32>, vector<16x96xf32>, vector<8x96xf32> -> vector<8x96xf32>
    %c1_224 = arith.constant 1 : index
    %c0_225 = arith.constant 0 : index
    %c0_226 = arith.constant 0 : index
    %185 = vector.load %arg16[%c1_224, %c0_225, %c0_226] : memref<2x8x16xf32, #tpu.memory_space<vmem>>, vector<1x8x16xf32>
    %186 = vector.shape_cast %185 : vector<1x8x16xf32> to vector<8x16xf32>
    %cst_227 = arith.constant dense<0.000000e+00> : vector<8x96xf32>
    %187 = tpu.matmul %186, %181, %cst_227 {dimension_numbers = #tpu.dot_dimension_numbers<[1], [0], [0], [1], [0, 0, 1, 1], [], []>} : vector<8x16xf32>, vector<16x96xf32>, vector<8x96xf32> -> vector<8x96xf32>
    %188 = arith.maximumf %184, %187 : vector<8x96xf32>
    %c0_228 = arith.constant 0 : index
    %c0_229 = arith.constant 0 : index
    %c0_230 = arith.constant 0 : index
    %189 = vector.load %arg17[%c0_228, %c0_229, %c0_230] : memref<2x96x48xf32, #tpu.memory_space<vmem>>, vector<1x96x48xf32>
    %190 = vector.shape_cast %189 : vector<1x96x48xf32> to vector<96x48xf32>
    %cst_231 = arith.constant dense<0.000000e+00> : vector<8x48xf32>
    %191 = tpu.matmul %188, %190, %cst_231 {dimension_numbers = #tpu.dot_dimension_numbers<[1], [0], [0], [1], [0, 0, 1, 1], [], []>} : vector<8x96xf32>, vector<96x48xf32>, vector<8x48xf32> -> vector<8x48xf32>
    %c1_232 = arith.constant 1 : index
    %c0_233 = arith.constant 0 : index
    %c0_234 = arith.constant 0 : index
    %192 = vector.load %arg17[%c1_232, %c0_233, %c0_234] : memref<2x96x48xf32, #tpu.memory_space<vmem>>, vector<1x96x48xf32>
    %193 = vector.shape_cast %192 : vector<1x96x48xf32> to vector<96x48xf32>
    %cst_235 = arith.constant dense<0.000000e+00> : vector<8x48xf32>
    %194 = tpu.matmul %188, %193, %cst_235 {dimension_numbers = #tpu.dot_dimension_numbers<[1], [0], [0], [1], [0, 0, 1, 1], [], []>} : vector<8x96xf32>, vector<96x48xf32>, vector<8x48xf32> -> vector<8x48xf32>
    %195 = arith.maximumf %191, %194 : vector<8x48xf32>
    %c0_236 = arith.constant 0 : index
    %c0_237 = arith.constant 0 : index
    %196 = vector.load %arg29[%c0_236, %c0_237] : memref<8x48xf32, #tpu.memory_space<vmem>>, vector<8x48xf32>
    tpu.vector_store %arg29[%c0_236, %c0_237], %195 {strides = array<i32>} : memref<8x48xf32, #tpu.memory_space<vmem>>, vector<8x48xf32>,
    %cst_238 = arith.constant 0.000000e+00 : f32
    %197 = vector.broadcast %cst_238 : f32 to vector<2x100xf32>
    %c0_239 = arith.constant 0 : index
    %c0_240 = arith.constant 0 : index
    %198 = vector.load %arg29[%c0_239, %c0_240] : memref<8x48xf32, #tpu.memory_space<vmem>>, vector<2x48xf32>
    %c0_241 = arith.constant 0 : index
    %c0_242 = arith.constant 0 : index
    %c0_243 = arith.constant 0 : index
    %199 = vector.load %arg18[%c0_241, %c0_242, %c0_243] : memref<4x48x100xf32, #tpu.memory_space<vmem>>, vector<1x48x100xf32>
    %200 = vector.shape_cast %199 : vector<1x48x100xf32> to vector<48x100xf32>
    %cst_244 = arith.constant dense<0.000000e+00> : vector<2x100xf32>
    %201 = tpu.matmul %198, %200, %cst_244 {dimension_numbers = #tpu.dot_dimension_numbers<[1], [0], [0], [1], [0, 0, 1, 1], [], []>} : vector<2x48xf32>, vector<48x100xf32>, vector<2x100xf32> -> vector<2x100xf32>
    %202 = arith.addf %197, %201 : vector<2x100xf32>
    %c2_245 = arith.constant 2 : index
    %c0_246 = arith.constant 0 : index
    %203 = vector.load %arg29[%c2_245, %c0_246] : memref<8x48xf32, #tpu.memory_space<vmem>>, vector<2x48xf32>
    %c1_247 = arith.constant 1 : index
    %c0_248 = arith.constant 0 : index
    %c0_249 = arith.constant 0 : index
    %204 = vector.load %arg18[%c1_247, %c0_248, %c0_249] : memref<4x48x100xf32, #tpu.memory_space<vmem>>, vector<1x48x100xf32>
    %205 = vector.shape_cast %204 : vector<1x48x100xf32> to vector<48x100xf32>
    %cst_250 = arith.constant dense<0.000000e+00> : vector<2x100xf32>
    %206 = tpu.matmul %203, %205, %cst_250 {dimension_numbers = #tpu.dot_dimension_numbers<[1], [0], [0], [1], [0, 0, 1, 1], [], []>} : vector<2x48xf32>, vector<48x100xf32>, vector<2x100xf32> -> vector<2x100xf32>
    %207 = arith.addf %202, %206 : vector<2x100xf32>
    %c4 = arith.constant 4 : index
    %c0_251 = arith.constant 0 : index
    %208 = vector.load %arg29[%c4, %c0_251] : memref<8x48xf32, #tpu.memory_space<vmem>>, vector<2x48xf32>
    %c2_252 = arith.constant 2 : index
    %c0_253 = arith.constant 0 : index
    %c0_254 = arith.constant 0 : index
    %209 = vector.load %arg18[%c2_252, %c0_253, %c0_254] : memref<4x48x100xf32, #tpu.memory_space<vmem>>, vector<1x48x100xf32>
    %210 = vector.shape_cast %209 : vector<1x48x100xf32> to vector<48x100xf32>
    %cst_255 = arith.constant dense<0.000000e+00> : vector<2x100xf32>
    %211 = tpu.matmul %208, %210, %cst_255 {dimension_numbers = #tpu.dot_dimension_numbers<[1], [0], [0], [1], [0, 0, 1, 1], [], []>} : vector<2x48xf32>, vector<48x100xf32>, vector<2x100xf32> -> vector<2x100xf32>
    %212 = arith.addf %207, %211 : vector<2x100xf32>
    %c6 = arith.constant 6 : index
    %c0_256 = arith.constant 0 : index
    %213 = vector.load %arg29[%c6, %c0_256] : memref<8x48xf32, #tpu.memory_space<vmem>>, vector<2x48xf32>
    %c3 = arith.constant 3 : index
    %c0_257 = arith.constant 0 : index
    %c0_258 = arith.constant 0 : index
    %214 = vector.load %arg18[%c3, %c0_257, %c0_258] : memref<4x48x100xf32, #tpu.memory_space<vmem>>, vector<1x48x100xf32>
    %215 = vector.shape_cast %214 : vector<1x48x100xf32> to vector<48x100xf32>
    %cst_259 = arith.constant dense<0.000000e+00> : vector<2x100xf32>
    %216 = tpu.matmul %213, %215, %cst_259 {dimension_numbers = #tpu.dot_dimension_numbers<[1], [0], [0], [1], [0, 0, 1, 1], [], []>} : vector<2x48xf32>, vector<48x100xf32>, vector<2x100xf32> -> vector<2x100xf32>
    %217 = arith.addf %212, %216 : vector<2x100xf32>
    %c0_260 = arith.constant 0 : index
    %c0_261 = arith.constant 0 : index
    %218 = vector.load %arg19[%c0_260, %c0_261] : memref<1x100xf32, #tpu.memory_space<vmem>>, vector<1x100xf32>
    %219 = vector.broadcast %218 : vector<1x100xf32> to vector<2x100xf32>
    %220 = arith.addf %217, %219 : vector<2x100xf32>
    %cst_262 = arith.constant 0.000000e+00 : f32
    %221 = vector.broadcast %cst_262 : f32 to vector<2x100xf32>
    %222 = arith.maximumf %220, %221 : vector<2x100xf32>
    %c0_263 = arith.constant 0 : index
    %c0_264 = arith.constant 0 : index
    %223 = vector.load %arg20[%c0_263, %c0_264] : memref<100x2xf32, #tpu.memory_space<vmem>>, vector<100x2xf32>
    %cst_265 = arith.constant dense<0.000000e+00> : vector<2x2xf32>
    %224 = tpu.matmul %222, %223, %cst_265 {dimension_numbers = #tpu.dot_dimension_numbers<[1], [0], [0], [1], [0, 0, 1, 1], [], []>} : vector<2x100xf32>, vector<100x2xf32>, vector<2x2xf32> -> vector<2x2xf32>
    %c0_266 = arith.constant 0 : index
    %c0_267 = arith.constant 0 : index
    %225 = vector.load %arg21[%c0_266, %c0_267] : memref<1x2xf32, #tpu.memory_space<vmem>>, vector<1x2xf32>
    %226 = vector.broadcast %225 : vector<1x2xf32> to vector<2x2xf32>
    %227 = arith.addf %224, %226 : vector<2x2xf32>
    %c0_268 = arith.constant 0 : index
    %c0_269 = arith.constant 0 : index
    %c0_270 = arith.constant 0 : index
    %228 = vector.load %arg22[%c0_268, %c0_269, %c0_270] : memref<1x2x2xf32, #tpu.memory_space<vmem>>, vector<1x2x2xf32>
    %229 = vector.shape_cast %228 : vector<1x2x2xf32> to vector<2x2xf32>
    %230 = vector.shape_cast %227 : vector<2x2xf32> to vector<1x2x2xf32>
    tpu.vector_store %arg22[%c0_268, %c0_269, %c0_270], %230 {strides = array<i32>} : memref<1x2x2xf32, #tpu.memory_space<vmem>>, vector<1x2x2xf32>,
    return
  }
  func.func @transform_0(%arg0: i32) -> (i32, i32, i32) {
    %c0_i32 = arith.constant 0 : i32
    %c0_i32_0 = arith.constant 0 : i32
    %c0_i32_1 = arith.constant 0 : i32
    return %arg0, %c0_i32, %c0_i32_0 : i32, i32, i32
  }
  func.func @transform_1(%arg0: i32) -> (i32, i32, i32) {
    %c0_i32 = arith.constant 0 : i32
    %c0_i32_0 = arith.constant 0 : i32
    %c0_i32_1 = arith.constant 0 : i32
    %c0_i32_2 = arith.constant 0 : i32
    return %c0_i32, %c0_i32_0, %c0_i32_1 : i32, i32, i32
  }
  func.func @transform_2(%arg0: i32) -> (i32, i32) {
    %c0_i32 = arith.constant 0 : i32
    %c0_i32_0 = arith.constant 0 : i32
    %c0_i32_1 = arith.constant 0 : i32
    return %c0_i32, %c0_i32_0 : i32, i32
  }
  func.func @transform_3(%arg0: i32) -> (i32, i32, i32) {
    %c0_i32 = arith.constant 0 : i32
    %c0_i32_0 = arith.constant 0 : i32
    %c0_i32_1 = arith.constant 0 : i32
    %c0_i32_2 = arith.constant 0 : i32
    return %c0_i32, %c0_i32_0, %c0_i32_1 : i32, i32, i32
  }
  func.func @transform_4(%arg0: i32) -> (i32, i32) {
    %c0_i32 = arith.constant 0 : i32
    %c0_i32_0 = arith.constant 0 : i32
    %c0_i32_1 = arith.constant 0 : i32
    return %c0_i32, %c0_i32_0 : i32, i32
  }
  func.func @transform_5(%arg0: i32) -> (i32, i32, i32) {
    %c0_i32 = arith.constant 0 : i32
    %c0_i32_0 = arith.constant 0 : i32
    %c0_i32_1 = arith.constant 0 : i32
    %c0_i32_2 = arith.constant 0 : i32
    return %c0_i32, %c0_i32_0, %c0_i32_1 : i32, i32, i32
  }
  func.func @transform_6(%arg0: i32) -> (i32, i32) {
    %c0_i32 = arith.constant 0 : i32
    %c0_i32_0 = arith.constant 0 : i32
    %c0_i32_1 = arith.constant 0 : i32
    return %c0_i32, %c0_i32_0 : i32, i32
  }
  func.func @transform_7(%arg0: i32) -> (i32, i32, i32) {
    %c0_i32 = arith.constant 0 : i32
    %c0_i32_0 = arith.constant 0 : i32
    %c0_i32_1 = arith.constant 0 : i32
    %c0_i32_2 = arith.constant 0 : i32
    return %c0_i32, %c0_i32_0, %c0_i32_1 : i32, i32, i32
  }
  func.func @transform_8(%arg0: i32) -> (i32, i32) {
    %c0_i32 = arith.constant 0 : i32
    %c0_i32_0 = arith.constant 0 : i32
    %c0_i32_1 = arith.constant 0 : i32
    return %c0_i32, %c0_i32_0 : i32, i32
  }
  func.func @transform_9(%arg0: i32) -> (i32, i32, i32) {
    %c0_i32 = arith.constant 0 : i32
    %c0_i32_0 = arith.constant 0 : i32
    %c0_i32_1 = arith.constant 0 : i32
    %c0_i32_2 = arith.constant 0 : i32
    return %c0_i32, %c0_i32_0, %c0_i32_1 : i32, i32, i32
  }
  func.func @transform_10(%arg0: i32) -> (i32, i32) {
    %c0_i32 = arith.constant 0 : i32
    %c0_i32_0 = arith.constant 0 : i32
    %c0_i32_1 = arith.constant 0 : i32
    return %c0_i32, %c0_i32_0 : i32, i32
  }
  func.func @transform_11(%arg0: i32) -> (i32, i32, i32) {
    %c0_i32 = arith.constant 0 : i32
    %c0_i32_0 = arith.constant 0 : i32
    %c0_i32_1 = arith.constant 0 : i32
    %c0_i32_2 = arith.constant 0 : i32
    return %c0_i32, %c0_i32_0, %c0_i32_1 : i32, i32, i32
  }
  func.func @transform_12(%arg0: i32) -> (i32, i32) {
    %c0_i32 = arith.constant 0 : i32
    %c0_i32_0 = arith.constant 0 : i32
    %c0_i32_1 = arith.constant 0 : i32
    return %c0_i32, %c0_i32_0 : i32, i32
  }
  func.func @transform_13(%arg0: i32) -> (i32, i32, i32) {
    %c0_i32 = arith.constant 0 : i32
    %c0_i32_0 = arith.constant 0 : i32
    %c0_i32_1 = arith.constant 0 : i32
    %c0_i32_2 = arith.constant 0 : i32
    return %c0_i32, %c0_i32_0, %c0_i32_1 : i32, i32, i32
  }
  func.func @transform_14(%arg0: i32) -> (i32, i32, i32) {
    %c0_i32 = arith.constant 0 : i32
    %c0_i32_0 = arith.constant 0 : i32
    %c0_i32_1 = arith.constant 0 : i32
    %c0_i32_2 = arith.constant 0 : i32
    return %c0_i32, %c0_i32_0, %c0_i32_1 : i32, i32, i32
  }
  func.func @transform_15(%arg0: i32) -> (i32, i32, i32) {
    %c0_i32 = arith.constant 0 : i32
    %c0_i32_0 = arith.constant 0 : i32
    %c0_i32_1 = arith.constant 0 : i32
    %c0_i32_2 = arith.constant 0 : i32
    return %c0_i32, %c0_i32_0, %c0_i32_1 : i32, i32, i32
  }
  func.func @transform_16(%arg0: i32) -> (i32, i32, i32) {
    %c0_i32 = arith.constant 0 : i32
    %c0_i32_0 = arith.constant 0 : i32
    %c0_i32_1 = arith.constant 0 : i32
    %c0_i32_2 = arith.constant 0 : i32
    return %c0_i32, %c0_i32_0, %c0_i32_1 : i32, i32, i32
  }
  func.func @transform_17(%arg0: i32) -> (i32, i32, i32) {
    %c0_i32 = arith.constant 0 : i32
    %c0_i32_0 = arith.constant 0 : i32
    %c0_i32_1 = arith.constant 0 : i32
    %c0_i32_2 = arith.constant 0 : i32
    return %c0_i32, %c0_i32_0, %c0_i32_1 : i32, i32, i32
  }
  func.func @transform_18(%arg0: i32) -> (i32, i32) {
    %c0_i32 = arith.constant 0 : i32
    %c0_i32_0 = arith.constant 0 : i32
    %c0_i32_1 = arith.constant 0 : i32
    return %c0_i32, %c0_i32_0 : i32, i32
  }
  func.func @transform_19(%arg0: i32) -> (i32, i32) {
    %c0_i32 = arith.constant 0 : i32
    %c0_i32_0 = arith.constant 0 : i32
    %c0_i32_1 = arith.constant 0 : i32
    return %c0_i32, %c0_i32_0 : i32, i32
  }
  func.func @transform_20(%arg0: i32) -> (i32, i32) {
    %c0_i32 = arith.constant 0 : i32
    %c0_i32_0 = arith.constant 0 : i32
    %c0_i32_1 = arith.constant 0 : i32
    return %c0_i32, %c0_i32_0 : i32, i32
  }
  func.func @transform_21(%arg0: i32) -> (i32, i32, i32) {
    %c0_i32 = arith.constant 0 : i32
    %c0_i32_0 = arith.constant 0 : i32
    %c0_i32_1 = arith.constant 0 : i32
    return %arg0, %c0_i32, %c0_i32_0 : i32, i32, i32
  }
}

</mosaic_0001>

<bundles_post_ra>
// kernel: tile.33
= control target key start
LH: loop header
LB: loop body
LE: loop exit
PB: predicated region body
PF: predicated region fallthrough
CT: control target
= control target key end

     0   :  { %s28_s0 = inlined_call_operand.vmem [shape: f32[6], index: 0, kind: input, shape index: {}]   ;;  %s29_s1 = inlined_call_operand.vmem [shape: f32[16,6], index: 1, kind: output, shape index: {}]  }
   0x1   :  { %v4_v0 = vld [vmem:[%s28_s0] ss:$0 sm:$0xff] }
   0x2   :  { %5 = vst [vmem:[%s29_s1] sm:$0xff] %v4_v0 }
   0x3   :  { %8 = vst [vmem:[%s29_s1 + $0x8] sm:$0xff] %v4_v0 }

// kernel: tile.34
= control target key start
LH: loop header
LB: loop body
LE: loop exit
PB: predicated region body
PF: predicated region fallthrough
CT: control target
= control target key end

     0   :  { %s131_s10 = smov 90   ;;  %s132_s11 = smov 78   ;;  %vm3_vm0 = vcmask 48128   ;;  %vm9_vm1 = vcmask 786128   ;;  %vm15_vm2 = vcmask 736928   ;;  %vm21_vm3 = vcmask 687728   ;;  %s207_s0 = inlined_call_operand.vmem [shape: f32[16,6], index: 0, kind: input, shape index: {}]   ;;  %s208_s1 = inlined_call_operand.vmem [shape: f32[1,96], index: 1, kind: output, shape index: {}]  }
   0x1   :  { %v101_v0 = vld [vmem:[%s207_s0 + $0xf] sm:$0x1]   ;;  %v103_v1 = vld [vmem:[%s207_s0 + $0xd] sm:$0x1]   ;;  %v105_v2 = vld [vmem:[%s207_s0 + $0xb] sm:$0x1]  }
   0x2   :  { %7 = vrot.lane.b32.xlu0 %v101_v0, %s131_s10  ;;  %19 = vrot.lane.b32.xlu1 %v103_v1, %s132_s11  ;;  %s133_s14 = smov 66   ;;  %v102_v3 = vld [vmem:[%s207_s0 + $0xe] sm:$0x1]   ;;  %v104_v4 = vld [vmem:[%s207_s0 + $0xc] sm:$0x1]   ;;  %s134_s19 = smov 84  }
   0x3   :  { %31 = vrot.lane.b32.xlu2 %v105_v2, %s133_s14  ;;  %s135_s20 = smov 72   ;;  %v106_v5 = vld [vmem:[%s207_s0 + $0xa] sm:$0x1]   ;;  %s136_s23 = smov 60   ;;  %v107_v6 = vld [vmem:[%s207_s0 + $0x9] sm:$0x1]  }
   0x4   :  { %v108_v7 = vld [vmem:[%s207_s0 + $0x8] sm:$0x1]   ;;  %s137_s28 = smov 54   ;;  %s138_s29 = smov 48   ;;  %v109_v8 = vld [vmem:[%s207_s0 + $0x7] sm:$0x1]  }
   0x5   :  { %s139_s3 = smov 42   ;;  %v110_v9 = vld [vmem:[%s207_s0 + $0x6] sm:$0x1]   ;;  %v111_v10 = vld [vmem:[%s207_s0 + $0x5] sm:$0x1]   ;;  %s140_s8 = smov 36  }
   0x6   :  { %s141_s9 = smov 30   ;;  %v112_v11 = vld [vmem:[%s207_s0 + $0x4] sm:$0x1]   ;;  %s142_s12 = smov 24   ;;  %v113_v12 = vld [vmem:[%s207_s0 + $0x3] sm:$0x1]  }
   0x7   :  { %v114_v13 = vld [vmem:[%s207_s0 + $0x2] sm:$0x1]   ;;  %s143_s17 = smov 18   ;;  %s144_s18 = smov 12   ;;  %v115_v14 = vld [vmem:[%s207_s0 + $0x1] sm:$0x1]  }
   0x8   :  { %s145_s21 = smov 6   ;;  %v2_v15 = vld [vmem:[%s207_s0] sm:$0x1]   ;;  %vm27_vm4 = vcmask 638528   ;;  %vm33_vm5 = vcmask 589328   ;;  %vm39_vm6 = vcmask 540128  }
   0x9   :  { %4 = vst.msk [vmem:[#allocation0] sm:$0x1] %vm3_vm0, %v2_v15   ;;  %vm45_vm7 = vcmask 490928   ;;  %vm51_vm8 = vcmask 441728   ;;  %vm57_vm9 = vcmask 392528   ;;  %vm63_vm10 = vcmask 343328  }
   0xa   :  { %13 = vrot.lane.b32.xlu0 %v102_v3, %s134_s19  ;;  %25 = vrot.lane.b32.xlu1 %v104_v4, %s135_s20  ;;  %vm69_vm11 = vcmask 294128   ;;  %vm75_vm12 = vcmask 244928   ;;  %vm81_vm13 = vcmask 195728   ;;  %vm87_vm14 = vcmask 146528  }
   0xb   :  { %37 = vrot.lane.b32.xlu2 %v106_v5, %s136_s23  ;;  %vm93_vm15 = vcmask 97328  }
  0x12   :  { %43 = vrot.lane.b32.xlu0 %v107_v6, %s137_s28  ;;  %49 = vrot.lane.b32.xlu1 %v108_v7, %s138_s29 }
  0x13   :  { %55 = vrot.lane.b32.xlu2 %v109_v8, %s139_s3 }
  0x1a   :  { %61 = vrot.lane.b32.xlu0 %v110_v9, %s140_s8  ;;  %67 = vrot.lane.b32.xlu1 %v111_v10, %s141_s9 }
  0x1b   :  { %73 = vrot.lane.b32.xlu2 %v112_v11, %s142_s12 }
  0x22   :  { %79 = vrot.lane.b32.xlu0 %v113_v12, %s143_s17  ;;  %85 = vrot.lane.b32.xlu1 %v114_v13, %s144_s18 }
  0x23   :  { %91 = vrot.lane.b32.xlu2 %v115_v14, %s145_s21 }
  0x5d   :  { %v32_v16 = vpop.permute.xlu2 %31  }
  0x65   :  { %v38_v17 = vpop.permute.xlu2 %37  }
  0x6d   :  { %v56_v18 = vpop.permute.xlu2 %55  }
  0x74   :  { %v8_v19 = vpop.permute.xlu0 %7   ;;  %v20_v20 = vpop.permute.xlu1 %19  }
  0x75   :  { %10 = vst.msk [vmem:[#allocation0] sm:$0x1] %vm9_vm1, %v8_v19   ;;  %v74_v21 = vpop.permute.xlu2 %73  }
  0x7c   :  { %v14_v22 = vpop.permute.xlu0 %13   ;;  %v26_v23 = vpop.permute.xlu1 %25  }
  0x7d   :  { %16 = vst.msk [vmem:[#allocation0] sm:$0x1] %vm15_vm2, %v14_v22   ;;  %v92_v24 = vpop.permute.xlu2 %91  }
  0x7e   :  { %22 = vst.msk [vmem:[#allocation0] sm:$0x1] %vm21_vm3, %v20_v20  }
  0x7f   :  { %28 = vst.msk [vmem:[#allocation0] sm:$0x1] %vm27_vm4, %v26_v23  }
  0x80   :  { %34 = vst.msk [vmem:[#allocation0] sm:$0x1] %vm33_vm5, %v32_v16  }
  0x81   :  { %40 = vst.msk [vmem:[#allocation0] sm:$0x1] %vm39_vm6, %v38_v17  }
  0x84   :  { %v44_v25 = vpop.permute.xlu0 %43   ;;  %v50_v26 = vpop.permute.xlu1 %49  }
  0x85   :  { %46 = vst.msk [vmem:[#allocation0] sm:$0x1] %vm45_vm7, %v44_v25  }
  0x86   :  { %52 = vst.msk [vmem:[#allocation0] sm:$0x1] %vm51_vm8, %v50_v26  }
  0x87   :  { %58 = vst.msk [vmem:[#allocation0] sm:$0x1] %vm57_vm9, %v56_v18  }
  0x8c   :  { %v62_v27 = vpop.permute.xlu0 %61   ;;  %v68_v28 = vpop.permute.xlu1 %67  }
  0x8d   :  { %64 = vst.msk [vmem:[#allocation0] sm:$0x1] %vm63_vm10, %v62_v27  }
  0x8e   :  { %70 = vst.msk [vmem:[#allocation0] sm:$0x1] %vm69_vm11, %v68_v28  }
  0x8f   :  { %76 = vst.msk [vmem:[#allocation0] sm:$0x1] %vm75_vm12, %v74_v21  }
  0x94   :  { %v80_v29 = vpop.permute.xlu0 %79   ;;  %v86_v30 = vpop.permute.xlu1 %85  }
  0x95   :  { %82 = vst.msk [vmem:[#allocation0] sm:$0x1] %vm81_vm13, %v80_v29  }
  0x96   :  { %88 = vst.msk [vmem:[#allocation0] sm:$0x1] %vm87_vm14, %v86_v30  }
  0x97   :  { %94 = vst.msk [vmem:[#allocation0] sm:$0x1] %vm93_vm15, %v92_v24  }
  0x9e   :  { %v97_v31 = vld [vmem:[#allocation0] sm:$0x1] }
  0x9f   :  { %100 = vst [vmem:[%s208_s1] sm:$0x1] %v97_v31 }

// kernel: tile.43
= control target key start
LH: loop header
LB: loop body
LE: loop exit
PB: predicated region body
PF: predicated region fallthrough
CT: control target
= control target key end

     0   :  { %s22_s0 = inlined_call_operand.vmem [shape: f32[12], index: 0, kind: input, shape index: {}]   ;;  %s23_s1 = inlined_call_operand.vmem [shape: f32[8,12], index: 1, kind: output, shape index: {}]  }
   0x1   :  { %v4_v0 = vld [vmem:[%s22_s0] ss:$0 sm:$0xff] }
   0x2   :  { %5 = vst [vmem:[%s23_s1] sm:$0xff] %v4_v0 }

// kernel: tile.44
= control target key start
LH: loop header
LB: loop body
LE: loop exit
PB: predicated region body
PF: predicated region fallthrough
CT: control target
= control target key end

     0   :  { %s67_s10 = smov 84   ;;  %s68_s11 = smov 60   ;;  %vm3_vm0 = vcmask 97280   ;;  %vm9_vm1 = vcmask 786080   ;;  %vm15_vm2 = vcmask 687680   ;;  %vm21_vm3 = vcmask 589280   ;;  %s111_s0 = inlined_call_operand.vmem [shape: f32[8,12], index: 0, kind: input, shape index: {}]   ;;  %s112_s1 = inlined_call_operand.vmem [shape: f32[1,96], index: 1, kind: output, shape index: {}]  }
   0x1   :  { %v53_v0 = vld [vmem:[%s111_s0 + $0x7] sm:$0x1]   ;;  %v55_v1 = vld [vmem:[%s111_s0 + $0x5] sm:$0x1]   ;;  %v57_v2 = vld [vmem:[%s111_s0 + $0x3] sm:$0x1]  }
   0x2   :  { %7 = vrot.lane.b32.xlu0 %v53_v0, %s67_s10  ;;  %19 = vrot.lane.b32.xlu1 %v55_v1, %s68_s11  ;;  %s69_s14 = smov 36   ;;  %v54_v3 = vld [vmem:[%s111_s0 + $0x6] sm:$0x1]   ;;  %v56_v4 = vld [vmem:[%s111_s0 + $0x4] sm:$0x1]   ;;  %s70_s21 = smov 72  }
   0x3   :  { %31 = vrot.lane.b32.xlu2 %v57_v2, %s69_s14  ;;  %v58_v5 = vld [vmem:[%s111_s0 + $0x2] sm:$0x1]   ;;  %s71_s22 = smov 48   ;;  %s72_s23 = smov 24   ;;  %v59_v6 = vld [vmem:[%s111_s0 + $0x1] sm:$0x1]  }
   0x4   :  { %s73_s26 = smov 12   ;;  %v2_v7 = vld [vmem:[%s111_s0] sm:$0x1]   ;;  %vm27_vm4 = vcmask 490880   ;;  %vm33_vm5 = vcmask 392480   ;;  %vm39_vm6 = vcmask 294080  }
   0x5   :  { %4 = vst.msk [vmem:[#allocation0] sm:$0x1] %vm3_vm0, %v2_v7   ;;  %vm45_vm7 = vcmask 195680  }
   0xa   :  { %13 = vrot.lane.b32.xlu0 %v54_v3, %s70_s21  ;;  %25 = vrot.lane.b32.xlu1 %v56_v4, %s71_s22 }
   0xb   :  { %37 = vrot.lane.b32.xlu2 %v58_v5, %s72_s23 }
  0x12   :  { %43 = vrot.lane.b32.xlu0 %v59_v6, %s73_s26 }
  0x5d   :  { %v32_v8 = vpop.permute.xlu2 %31  }
  0x65   :  { %v38_v9 = vpop.permute.xlu2 %37  }
  0x74   :  { %v8_v10 = vpop.permute.xlu0 %7   ;;  %v20_v11 = vpop.permute.xlu1 %19  }
  0x75   :  { %10 = vst.msk [vmem:[#allocation0] sm:$0x1] %vm9_vm1, %v8_v10  }
  0x7c   :  { %v14_v12 = vpop.permute.xlu0 %13   ;;  %v26_v13 = vpop.permute.xlu1 %25  }
  0x7d   :  { %16 = vst.msk [vmem:[#allocation0] sm:$0x1] %vm15_vm2, %v14_v12  }
  0x7e   :  { %22 = vst.msk [vmem:[#allocation0] sm:$0x1] %vm21_vm3, %v20_v11  }
  0x7f   :  { %28 = vst.msk [vmem:[#allocation0] sm:$0x1] %vm27_vm4, %v26_v13  }
  0x80   :  { %34 = vst.msk [vmem:[#allocation0] sm:$0x1] %vm33_vm5, %v32_v8  }
  0x81   :  { %40 = vst.msk [vmem:[#allocation0] sm:$0x1] %vm39_vm6, %v38_v9  }
  0x84   :  { %v44_v14 = vpop.permute.xlu0 %43  }
  0x85   :  { %46 = vst.msk [vmem:[#allocation0] sm:$0x1] %vm45_vm7, %v44_v14  }
  0x8c   :  { %v49_v15 = vld [vmem:[#allocation0] sm:$0x1] }
  0x8d   :  { %52 = vst [vmem:[%s112_s1] sm:$0x1] %v49_v15 }

// kernel: class_model_forward.1
= control target key start
LH: loop header
LB: loop body
LE: loop exit
PB: predicated region body
PF: predicated region fallthrough
CT: control target
= control target key end

     0   :  { %s3468_s0 = inlined_call_operand.vmem [shape: f32[4,16,48], index: 0, kind: input, shape index: {}]   ;;  %s3469_s1 = inlined_call_operand.vmem [shape: f32[3,48,96], index: 1, kind: input, shape index: {}]   ;;  %s3470_s2 = inlined_call_operand.vmem [shape: f32[1,96], index: 2, kind: input, shape index: {}]   ;;  %s3471_s3 = inlined_call_operand.vmem [shape: f32[3,96,96], index: 3, kind: input, shape index: {}]   ;;  %s3472_s4 = inlined_call_operand.vmem [shape: f32[1,96], index: 4, kind: input, shape index: {}]   ;;  %s3473_s5 = inlined_call_operand.vmem [shape: f32[3,48,96], index: 5, kind: input, shape index: {}]   ;;  %s3474_s6 = inlined_call_operand.vmem [shape: f32[1,96], index: 6, kind: input, shape index: {}]   ;;  %s3475_s7 = inlined_call_operand.vmem [shape: f32[3,96,96], index: 7, kind: input, shape index: {}]   ;;  %s3476_s8 = inlined_call_operand.vmem [shape: f32[1,96], index: 8, kind: input, shape index: {}]   ;;  %s3477_s9 = inlined_call_operand.vmem [shape: f32[3,96,96], index: 9, kind: input, shape index: {}]   ;;  %s3478_s10 = inlined_call_operand.vmem [shape: f32[1,96], index: 10, kind: input, shape index: {}]   ;;  %s3479_s11 = inlined_call_operand.vmem [shape: f32[3,96,96], index: 11, kind: input, shape index: {}]   ;;  %s3480_s12 = inlined_call_operand.vmem [shape: f32[1,96], index: 12, kind: input, shape index: {}]   ;;  %s3481_s13 = inlined_call_operand.vmem [shape: f32[2,16,32], index: 13, kind: input, shape index: {}]   ;;  %s3482_s14 = inlined_call_operand.vmem [shape: f32[2,96,48], index: 14, kind: input, shape index: {}]   ;;  %s3483_s15 = inlined_call_operand.vmem [shape: f32[2,8,16], index: 15, kind: input, shape index: {}]   ;;  %s3484_s16 = inlined_call_operand.vmem [shape: f32[2,96,48], index: 16, kind: input, shape index: {}]   ;;  %s3485_s17 = inlined_call_operand.vmem [shape: f32[4,48,100], index: 17, kind: input, shape index: {}]   ;;  %s3486_s18 = inlined_call_operand.vmem [shape: f32[1,100], index: 18, kind: input, shape index: {}]   ;;  %s3487_s19 = inlined_call_operand.vmem [shape: f32[100,2], index: 19, kind: input, shape index: {}]   ;;  %s3488_s20 = inlined_call_operand.vmem [shape: f32[1,2], index: 20, kind: input, shape index: {}]   ;;  %s3489_s21 = inlined_call_operand.vmem [shape: f32[2,2,2], index: 21, kind: output, shape index: {}]  }
   0x1   :  { %3493 = sst [smem:[#allocation9_spill]] %s3468_s0 }
   0x2   :  { %3494 = sst [smem:[#allocation10_spill]] %s3469_s1 }
   0x3   :  { %3495 = sst [smem:[#allocation11_spill]] %s3470_s2  ;;  %s2482_s2 = smov 0  }
   0x4   :  { %3496 = sst [smem:[#allocation12_spill]] %s3471_s3 }
   0x5   :  { %3497 = sst [smem:[#allocation13_spill]] %s3472_s4 }
   0x6   :  { %3498 = sst [smem:[#allocation14_spill]] %s3473_s5 }
   0x7 LB: > { %s2488_s25 = sadd.s32 4294967295, %s2369_s2   ;;  %p2107_p0 = scmp.ge.s32.totalorder %s2369_s2, 1  ;;  %s2369_s2 = sphi %s2482_s2, %s31_s2  }
   0x8   : > { %p589_p1 = scmp.lt.s32.totalorder %s2369_s2, 3 }
   0xa   : > { %p590_p2 = pnand %p2107_p0, %p589_p1 }
   0xb   : > { %s3499_s3 = sld [smem:[#allocation10_spill]] (!%p590_p2)  ;;  %s2108_s30 = sshll.u32 (!%p590_p2), %s2488_s25, 1 }
   0xc   : > { %593 = sbr.rel (%p590_p2) target bundleno = 1775 (0x6ef), region = 104  ;;  %p650_p3 = scmp.lt.s32.totalorder (!%p590_p2), %s2108_s30, 3 }
   0xd   : > { %s3500_s28 = sld [smem:[#allocation9_spill]] (!%p590_p2)  ;;  %p656_p4 = scmp.lt.s32.totalorder (!%p590_p2), %s2488_s25, 1 }
   0xe   : > { %s3501_s1 = sld [smem:[#allocation12_spill]] (!%p590_p2) }
   0xf   : > { %s3502_s5 = sld [smem:[#allocation11_spill]] (!%p590_p2) }
  0x10   : > { %s3503_s23 = sld [smem:[#allocation13_spill]] (!%p590_p2) }
  0x11   : > { %v2131_v0 = vld [vmem:[%s3499_s3 + $0x88] sm:$0xff]  ;;  %v2130_v1 = vld [vmem:[%s3499_s3 + $0x80] sm:$0xff]  ;;  %v2117_v2 = vld [vmem:[%s3499_s3 + $0x58] sm:$0xff]  ;;  %vm660_vm0 = vcmask 385024   ;;  %v2371_v8 = vmov 0.0   ;;  %s3506_s30 = smov (!%p650_p3, %s2108_s30), 3 }
  0x12   : > { %831 = vmatpush.msra.mxu2 %v2131_v0  ;;  %738 = vmatpush.msra.mxu0 %v2117_v2  ;;  %v704_v3 = vld [vmem:[%s3499_s3 + $0x28] sm:$0xff]  ;;  %v2116_v4 = vld [vmem:[%s3499_s3 + $0x50] sm:$0xff]  ;;  %v2129_v5 = vld [vmem:[%s3499_s3 + $0x78] sm:$0xff]  ;;  %661 = vst.msk [vmem:[#allocation2] sm:$0x1] %vm660_vm0, %v2371_v8  ;;  %vm690_vm1 = vcmask 392192  }
  0x13   : > { %779 = vmatpush.msra.mxu1 %v704_v3  ;;  %v703_v6 = vld [vmem:[%s3499_s3 + $0x20] sm:$0xff]  ;;  %v2115_v7 = vld [vmem:[%s3499_s3 + $0x48] sm:$0xff]  ;;  %v702_v9 = vld [vmem:[%s3499_s3 + $0x18] sm:$0xff]  ;;  %662 = vst.msk [vmem:[#allocation2 + $0x18] sm:$0x1] %vm660_vm0, %v2371_v8  ;;  %s2345_s0 = sshll.u32 %s3506_s30, 4 }
  0x14   : > { %832 = vmatpush.msra.mxu2 %v2130_v1  ;;  %739 = vmatpush.msra.mxu0 %v2116_v4  ;;  %v2128_v10 = vld [vmem:[%s3499_s3 + $0x70] sm:$0xff]  ;;  %v2127_v11 = vld [vmem:[%s3499_s3 + $0x68] sm:$0xff]  ;;  %v2114_v12 = vld [vmem:[%s3499_s3 + $0x40] sm:$0xff]  ;;  %663 = vst.msk [vmem:[#allocation2 + $0x11] sm:$0x1] %vm660_vm0, %v2371_v8  ;;  %s654_s30 = scalar_lea.vmem %s3500_s28, %s2345_s0  ;;  %vm665_vm2 = vcmask 778240  }
  0x15   : > { %780 = vmatpush.msra.mxu1 %v703_v6  ;;  %v701_v13 = vld [vmem:[%s3499_s3 + $0x10] sm:$0xff]  ;;  %v2113_v14 = vld [vmem:[%s3499_s3 + $0x38] sm:$0xff]  ;;  %v700_v15 = vld [vmem:[%s3499_s3 + $0x8] sm:$0xff]  ;;  %664 = vst.msk [vmem:[#allocation2 + $0x29] sm:$0x1] %vm660_vm0, %v2371_v8  ;;  %vm862_vm3 = vcmask 785408  }
  0x16   : > { %833 = vmatpush.msra.mxu2 %v2129_v5  ;;  %740 = vmatpush.msra.mxu0 %v2115_v7  ;;  %v2126_v16 = vld [vmem:[%s3499_s3 + $0x60] sm:$0xff]  ;;  %670 = vst.msk [vmem:[#allocation4] sm:$0x1] %vm660_vm0, %v2371_v8  ;;  %v687_v18 = vld [vmem:[%s654_s30 + $0x8] sm:$0xff]  ;;  %v2112_v19 = vld [vmem:[%s3499_s3 + $0x30] sm:$0xff]  ;;  %vm1058_vm4 = vcmask 261120  }
  0x17   : > { %781 = vmatpush.msra.mxu1 %v702_v9  ;;  %v686_v17 = vld [vmem:[%s654_s30] sm:$0xff]  ;;  %671 = vst.msk [vmem:[#allocation4 + $0x10] sm:$0x1] %vm660_vm0, %v2371_v8  ;;  %v688_v21 = vld [vmem:[%s654_s30 + $0x10] sm:$0xff]  ;;  %v2147_v22 = vld [vmem:[%s3501_s1 + $0xb8] sm:$0xff]  ;;  %s3504_s27 = sld [smem:[#allocation14_spill]] }
  0x18   : > { %834 = vmatpush.msra.mxu2 %v2128_v10  ;;  %741 = vmatpush.msra.mxu0 %v2114_v12  ;;  %691 = vst.msk [vmem:[#allocation2 + $0x1] sm:$0xff] %vm690_vm1, %v686_v17  ;;  %v699_v20 = vld [vmem:[%s3499_s3] sm:$0xff]  ;;  %v882_v23 = vld [vmem:[%s3501_s1 + $0x58] sm:$0xff]  ;;  %v2146_v25 = vld [vmem:[%s3501_s1 + $0xb0] sm:$0xff]  ;;  %vm1752_vm5 = vcmask 130048   ;;  %vm2024_vm6 = vcmask 1043456  }
  0x19   : > { %782 = vmatpush.msra.mxu1 %v701_v13  ;;  %692 = vst.msk [vmem:[#allocation2 + $0x9] sm:$0xff] %vm690_vm1, %v687_v18  ;;  %v689_v24 = vld [vmem:[%s654_s30 + $0x18] sm:$0xff]  ;;  %916 = vmatpush.msra.mxu3 %v2147_v22  ;;  %v881_v26 = vld [vmem:[%s3501_s1 + $0x50] sm:$0xff]  ;;  %v2145_v27 = vld [vmem:[%s3501_s1 + $0xa8] sm:$0xff]  ;;  %vm2020_vm7 = vcmask 818176   ;;  %s3508_s25 = smov (!%p656_p4, %s2488_s25), 1 }
  0x1a   : > { %835 = vmatpush.msra.mxu2 %v2127_v11  ;;  %742 = vmatpush.msra.mxu0 %v2113_v14  ;;  %672 = vst.msk [vmem:[#allocation4 + $0x9] sm:$0x1] %vm660_vm0, %v2371_v8  ;;  %v880_v28 = vld [vmem:[%s3501_s1 + $0x48] sm:$0xff]  ;;  %v2144_v31 = vld [vmem:[%s3501_s1 + $0xa0] sm:$0xff]  ;;  %v2143_v43 = vld [vmem:[%s3501_s1 + $0x98] sm:$0xff]  ;;  %s2111_s0 = sshll.u32 %s3508_s25, 1 }
  0x1b   : > { %783 = vmatpush.msra.mxu1 %v700_v15  ;;  %673 = vst.msk [vmem:[#allocation4 + $0x19] sm:$0x1] %vm660_vm0, %v2371_v8  ;;  %917 = vmatpush.msra.mxu3 %v2146_v25  ;;  %v879_v33 = vld [vmem:[%s3501_s1 + $0x40] sm:$0xff]  ;;  %v878_v44 = vld [vmem:[%s3501_s1 + $0x38] sm:$0xff]  ;;  %v2142_v46 = vld [vmem:[%s3501_s1 + $0x90] sm:$0xff]  ;;  %s659_s29 = scalar_lea.vmem %s3489_s21, %s2111_s0  ;;  %vm2048_vm8 = vcmask 9216  }
  0x1c   : > { %836 = vmatpush.msra.mxu2 %v2126_v16  ;;  %743 = vmatpush.msra.mxu0 %v2112_v19  ;;  %693 = vst.msk [vmem:[#allocation2 + $0x19] sm:$0xff] %vm690_vm1, %v688_v21  ;;  %v2167_v45 = vld [vmem:[%s3501_s1 + $0x118] sm:$0xff]  ;;  %v877_v47 = vld [vmem:[%s3501_s1 + $0x30] sm:$0xff]  ;;  %v2141_v49 = vld [vmem:[%s3501_s1 + $0x88] sm:$0xff] }
  0x1d   : > { %784 = vmatpush.msra.mxu1 %v699_v20  ;;  %694 = vst.msk [vmem:[#allocation2 + $0x21] sm:$0xff] %vm690_vm1, %v689_v24  ;;  %918 = vmatpush.msra.mxu3 %v2145_v27  ;;  %v2166_v48 = vld [vmem:[%s3501_s1 + $0x110] sm:$0xff]  ;;  %v876_v50 = vld [vmem:[%s3501_s1 + $0x28] sm:$0xff]  ;;  %v2140_v52 = vld [vmem:[%s3501_s1 + $0x80] sm:$0xff] }
  0x1e   : > { %957 = vmatpush.msrb.mxu0 %v882_v23  ;;  %v2165_v51 = vld [vmem:[%s3501_s1 + $0x108] sm:$0xff]  ;;  %v875_v53 = vld [vmem:[%s3501_s1 + $0x20] sm:$0xff]  ;;  %v2139_v55 = vld [vmem:[%s3501_s1 + $0x78] sm:$0xff]  ;;  %666 = vst.msk [vmem:[#allocation3] sm:$0x1] %vm665_vm2, %v2371_v8 }
  0x1f   : > { %v705_v29 = vld [vmem:[#allocation2 + $0x1] sm:$0xff]  ;;  %919 = vmatpush.msra.mxu3 %v2144_v31  ;;  %1015 = vmatpush.msrb.mxu1 %v2167_v45  ;;  %v874_v56 = vld [vmem:[%s3501_s1 + $0x18] sm:$0xff]  ;;  %667 = vst.msk [vmem:[#allocation3 + $0x18] sm:$0x1] %vm665_vm2, %v2371_v8  ;;  %v2138_v58 = vld [vmem:[%s3501_s1 + $0x70] sm:$0xff] }
  0x20   : > { %958 = vmatpush.msrb.mxu0 %v881_v26  ;;  %v695_v30 = vld [vmem:[#allocation2] sm:$0xff]  ;;  %v706_v34 = vld [vmem:[#allocation2 + $0x9] sm:$0xff]  ;;  %v2163_v57 = vld [vmem:[%s3501_s1 + $0xf8] sm:$0xff]  ;;  %668 = vst.msk [vmem:[#allocation3 + $0x11] sm:$0x1] %vm665_vm2, %v2371_v8 }
  0x21   : > { %v798_v32 = vld [vmem:[#allocation2 + $0x2] sm:$0xff]  ;;  %2118 = vmatmul.msk.f32.vlgmr.msra.gmra.mxu0 %vm690_vm1, %v705_v29  ;;  %2122 = vmatmul.msk.f32.vlgmr.msra.gmra.mxu1 %vm690_vm1, %v695_v30  ;;  %v799_v36 = vld [vmem:[#allocation2 + $0xa] sm:$0xff]  ;;  %669 = vst.msk [vmem:[#allocation3 + $0x29] sm:$0x1] %vm665_vm2, %v2371_v8  ;;  %v2159_v3 = vld [vmem:[%s3501_s1 + $0xd8] sm:$0xff] }
  0x22   : > { %2132 = vmatmul.msk.f32.vlgmr.msra.gmra.mxu2 %vm690_vm1, %v798_v32  ;;  %959 = vmatpush.msrb.mxu0 %v880_v28  ;;  %v696_v35 = vld [vmem:[#allocation2 + $0x8] sm:$0xff]  ;;  %v2164_v54 = vld [vmem:[%s3501_s1 + $0x100] sm:$0xff]  ;;  %v873_v59 = vld [vmem:[%s3501_s1 + $0x10] sm:$0xff]  ;;  %674 = vst.msk [vmem:[#allocation5] sm:$0x1] %vm665_vm2, %v2371_v8 }
  0x23   : > { %v707_v37 = vld [vmem:[#allocation2 + $0x19] sm:$0xff]  ;;  %920 = vmatpush.msra.mxu3 %v2143_v43  ;;  %1016 = vmatpush.msrb.mxu1 %v2166_v48  ;;  %v2162_v60 = vld [vmem:[%s3501_s1 + $0xf0] sm:$0xff]  ;;  %v2137_v61 = vld [vmem:[%s3501_s1 + $0x68] sm:$0xff]  ;;  %675 = vst.msk [vmem:[#allocation5 + $0x10] sm:$0x1] %vm665_vm2, %v2371_v8 }
  0x24   : > { %960 = vmatpush.msrb.mxu0 %v879_v33  ;;  %v697_v38 = vld [vmem:[#allocation2 + $0x18] sm:$0xff]  ;;  %v708_v40 = vld [vmem:[#allocation2 + $0x21] sm:$0xff]  ;;  %676 = vst.msk [vmem:[#allocation5 + $0x9] sm:$0x1] %vm665_vm2, %v2371_v8  ;;  %v2158_v4 = vld [vmem:[%s3501_s1 + $0xd0] sm:$0xff] }
  0x25   : > { %v800_v39 = vld [vmem:[#allocation2 + $0x1a] sm:$0xff]  ;;  %v801_v42 = vld [vmem:[#allocation2 + $0x22] sm:$0xff]  ;;  %921 = vmatpush.msra.mxu3 %v2142_v46  ;;  %1017 = vmatpush.msrb.mxu1 %v2165_v51  ;;  %677 = vst.msk [vmem:[#allocation5 + $0x19] sm:$0x1] %vm665_vm2, %v2371_v8 }
  0x26   : > { %v698_v41 = vld [vmem:[#allocation2 + $0x20] sm:$0xff]  ;;  %961 = vmatpush.msrb.mxu0 %v878_v44  ;;  %v872_v62 = vld [vmem:[%s3501_s1 + $0x8] sm:$0xff]  ;;  %678 = vst.msk [vmem:[#allocation6] sm:$0x1] %vm665_vm2, %v2371_v8 }
  0x27   : > { %922 = vmatpush.msra.mxu3 %v2141_v49  ;;  %1018 = vmatpush.msrb.mxu1 %v2164_v54  ;;  %v2161_v63 = vld [vmem:[%s3501_s1 + $0xe8] sm:$0xff]  ;;  %v2136_v0 = vld [vmem:[%s3501_s1 + $0x60] sm:$0xff]  ;;  %679 = vst.msk [vmem:[#allocation6 + $0x10] sm:$0x1] %vm665_vm2, %v2371_v8  ;;  %v2190_v54 = vld [vmem:[%s3482_s14 + $0xb0] sm:$0xff] }
  0x28   : > { %962 = vmatpush.msrb.mxu0 %v877_v47  ;;  %v871_v1 = vld [vmem:[%s3501_s1] sm:$0xff]  ;;  %680 = vst.msk [vmem:[#allocation6 + $0x9] sm:$0x1] %vm665_vm2, %v2371_v8  ;;  %v2157_v5 = vld [vmem:[%s3501_s1 + $0xc8] sm:$0xff] }
  0x29   : > { %2119 = vmatmul.msk.f32.gmra.mxu0 %vm690_vm1, %v706_v34  ;;  %2123 = vmatmul.msk.f32.gmra.mxu1 %vm690_vm1, %v696_v35  ;;  %v2160_v2 = vld [vmem:[%s3501_s1 + $0xe0] sm:$0xff]  ;;  %681 = vst.msk [vmem:[#allocation6 + $0x19] sm:$0x1] %vm665_vm2, %v2371_v8 }
  0x2a   : > { %2133 = vmatmul.msk.f32.gmra.mxu2 %vm690_vm1, %v799_v36  ;;  %963 = vmatpush.msrb.mxu0 %v876_v50  ;;  %682 = vst.msk [vmem:[#allocation7] sm:$0x1] %vm665_vm2, %v2371_v8  ;;  %v2156_v6 = vld [vmem:[%s3501_s1 + $0xc0] sm:$0xff] }
  0x2b   : > { %923 = vmatpush.msra.mxu3 %v2140_v52  ;;  %1019 = vmatpush.msrb.mxu1 %v2163_v57  ;;  %683 = vst.msk [vmem:[#allocation7 + $0x10] sm:$0x1] %vm665_vm2, %v2371_v8  ;;  %v2355_v11 = vld [vmem:[%s3502_s5] ss:$0 sm:$0xff]  ;;  %v2191_v52 = vld [vmem:[%s3482_s14 + $0xb8] sm:$0xff] }
  0x2c   : > { %964 = vmatpush.msrb.mxu0 %v875_v53  ;;  %684 = vst.msk [vmem:[#allocation7 + $0x9] sm:$0x1] %vm665_vm2, %v2371_v8  ;;  %v2188_v57 = vld [vmem:[%s3482_s14 + $0xa0] sm:$0xff] }
  0x2d   : > { %924 = vmatpush.msra.mxu3 %v2139_v55  ;;  %1020 = vmatpush.msrb.mxu1 %v2162_v60  ;;  %685 = vst.msk [vmem:[#allocation7 + $0x19] sm:$0x1] %vm665_vm2, %v2371_v8  ;;  %v2189_v55 = vld [vmem:[%s3482_s14 + $0xa8] sm:$0xff] }
  0x2e   : > { %965 = vmatpush.msrb.mxu0 %v874_v56 }
  0x2f   : > { %925 = vmatpush.msra.mxu3 %v2138_v58  ;;  %1021 = vmatpush.msrb.mxu1 %v2161_v63 }
  0x30   : > { %966 = vmatpush.msrb.mxu0 %v873_v59 }
  0x31   : > { %2120 = vmatmul.msk.f32.gmra.mxu0 %vm690_vm1, %v707_v37  ;;  %2124 = vmatmul.msk.f32.gmra.mxu1 %vm690_vm1, %v697_v38 }
  0x32   : > { %2134 = vmatmul.msk.f32.gmra.mxu2 %vm690_vm1, %v800_v39  ;;  %926 = vmatpush.msra.mxu3 %v2137_v61  ;;  %v2187_v61 = vld [vmem:[%s3482_s14 + $0x98] sm:$0xff] }
  0x33   : > { %967 = vmatpush.msrb.mxu0 %v872_v62  ;;  %1022 = vmatpush.msrb.mxu1 %v2160_v2 }
  0x34   : > { %927 = vmatpush.msra.mxu3 %v2136_v0 }
  0x35   : > { %968 = vmatpush.msrb.mxu0 %v871_v1  ;;  %1023 = vmatpush.msrb.mxu1 %v2159_v3  ;;  %v2186_v1 = vld [vmem:[%s3482_s14 + $0x90] sm:$0xff] }
  0x37   : > { %1024 = vmatpush.msrb.mxu1 %v2158_v4  ;;  %1180 = vmatpush.msra.mxu0 %v2191_v52  ;;  %v1208_v52 = vld [vmem:[%s3504_s27 + $0x18] sm:$0xff] }
  0x39   : > { %2121 = vmatmul.msk.f32.gmra.mxu0 %vm690_vm1, %v708_v40  ;;  %2125 = vmatmul.msk.f32.gmra.mxu1 %vm690_vm1, %v698_v41 }
  0x3a   : > { %2135 = vmatmul.msk.f32.gmra.mxu2 %vm690_vm1, %v801_v42  ;;  %1025 = vmatpush.msrb.mxu1 %v2157_v5  ;;  %v2356_v5 = vld [vmem:[%s3503_s23] ss:$0 sm:$0xff] }
  0x3b   : > { %1181 = vmatpush.msra.mxu0 %v2190_v54  ;;  %v1207_v54 = vld [vmem:[%s3504_s27 + $0x10] sm:$0xff] }
  0x3c   : > { %1026 = vmatpush.msrb.mxu1 %v2156_v6  ;;  %v2185_v6 = vld [vmem:[%s3482_s14 + $0x88] sm:$0xff] }
  0x3d   : > { %1182 = vmatpush.msra.mxu0 %v2189_v55  ;;  %v2195_v55 = vld [vmem:[%s3504_s27 + $0x38] sm:$0xff] }
  0x3f   : > { %1183 = vmatpush.msra.mxu0 %v2188_v57  ;;  %v1206_v57 = vld [vmem:[%s3504_s27 + $0x8] sm:$0xff] }
  0x41   : > { %1184 = vmatpush.msra.mxu0 %v2187_v61  ;;  %v2223_v61 = vld [vmem:[%s3475_s7 + $0xb8] sm:$0xff] }
  0x43   : > { %1185 = vmatpush.msra.mxu0 %v2186_v1  ;;  %v1338_v1 = vld [vmem:[%s3475_s7 + $0x50] sm:$0xff] }
  0x45   : > { %1186 = vmatpush.msra.mxu0 %v2185_v6  ;;  %v2220_v6 = vld [vmem:[%s3475_s7 + $0xa0] sm:$0xff] }
  0x9e   : > { %v745_v7 = vpop.f32.mrf.mxu0  ;;  %v786_v9 = vpop.f32.mrf.mxu1 }
  0x9f   : > { %v787_v10 = vadd.f32 %v786_v9, %v745_v7 }
  0xa5   : > { %v838_v12 = vpop.f32.mrf.mxu2 }
  0xa6   : > { %v850_v13 = vadd.f32 %v838_v12, %v787_v10  ;;  %v748_v14 = vpop.f32.mrf.mxu0  ;;  %v789_v15 = vpop.f32.mrf.mxu1 }
  0xa7   : > { %v790_v17 = vadd.f32 %v789_v15, %v748_v14 }
  0xa8   : > { %v858_v16 = vadd.f32 %v2355_v11, %v850_v13 }
  0xaa   : > { %863 = vst.msk [vmem:[#allocation3 + $0x1] sm:$0xff] %vm862_vm3, %v858_v16 }
  0xad   : > { %v841_v18 = vpop.f32.mrf.mxu2 }
  0xae   : > { %v851_v19 = vadd.f32 %v841_v18, %v790_v17  ;;  %v751_v8 = vpop.f32.mrf.mxu0  ;;  %v792_v20 = vpop.f32.mrf.mxu1  ;;  %v1056_v17 = vld [vmem:[%s3481_s13] sm:$0xff]  ;;  %v2174_v18 = vld [vmem:[%s3481_s13 + $0x10] sm:$0xff] }
  0xaf   : > { %v793_v24 = vadd.f32 %v792_v20, %v751_v8  ;;  %v1132_v8 = vld [vmem:[%s3482_s14 + $0x50] sm:$0xff]  ;;  %v1131_v20 = vld [vmem:[%s3482_s14 + $0x48] sm:$0xff] }
  0xb0   : > { %v859_v21 = vadd.f32 %v2355_v11, %v851_v19  ;;  %v1133_v19 = vld [vmem:[%s3482_s14 + $0x58] sm:$0xff] }
  0xb1   : > { %v883_v22 = vld [vmem:[#allocation3 + $0x1] sm:$0xff] }
  0xb2   : > { %v867_v23 = vld [vmem:[#allocation3] sm:$0xff]  ;;  %864 = vst.msk [vmem:[#allocation3 + $0x9] sm:$0xff] %vm862_vm3, %v859_v21  ;;  %2148 = vmatmul.msk.f32.vlgmr.msra.gmra.mxu3 %vm862_vm3, %v883_v22  ;;  %v1130_v21 = vld [vmem:[%s3482_s14 + $0x40] sm:$0xff]  ;;  %v1057_v22 = vld [vmem:[%s3481_s13 + $0x8] sm:$0xff] }
  0xb3   : > { %2152 = vmatmul.msk.f32.vlgmr.msrb.gmra.mxu0 %vm862_vm3, %v867_v23  ;;  %v2175_v23 = vld [vmem:[%s3481_s13 + $0x18] sm:$0xff] }
  0xb5   : > { %v844_v25 = vpop.f32.mrf.mxu2 }
  0xb6   : > { %v852_v26 = vadd.f32 %v844_v25, %v793_v24  ;;  %v754_v27 = vpop.f32.mrf.mxu0  ;;  %v795_v28 = vpop.f32.mrf.mxu1  ;;  %v1129_v24 = vld [vmem:[%s3482_s14 + $0x38] sm:$0xff]  ;;  %v1128_v25 = vld [vmem:[%s3482_s14 + $0x30] sm:$0xff] }
  0xb7   : > { %v796_v33 = vadd.f32 %v795_v28, %v754_v27  ;;  %v1126_v27 = vld [vmem:[%s3482_s14 + $0x20] sm:$0xff]  ;;  %v1125_v28 = vld [vmem:[%s3482_s14 + $0x18] sm:$0xff] }
  0xb8   : > { %v860_v29 = vadd.f32 %v2355_v11, %v852_v26  ;;  %v1127_v26 = vld [vmem:[%s3482_s14 + $0x28] sm:$0xff] }
  0xb9   : > { %v884_v30 = vld [vmem:[#allocation3 + $0x9] sm:$0xff] }
  0xba   : > { %v868_v31 = vld [vmem:[#allocation3 + $0x8] sm:$0xff]  ;;  %865 = vst.msk [vmem:[#allocation3 + $0x19] sm:$0xff] %vm862_vm3, %v860_v29  ;;  %2149 = vmatmul.msk.f32.gmra.mxu3 %vm862_vm3, %v884_v30  ;;  %v1124_v29 = vld [vmem:[%s3482_s14 + $0x10] sm:$0xff]  ;;  %v2184_v30 = vld [vmem:[%s3482_s14 + $0x80] sm:$0xff] }
  0xbb   : > { %v982_v32 = vld [vmem:[#allocation3 + $0x2] sm:$0xff]  ;;  %2153 = vmatmul.msk.f32.gmra.mxu0 %vm862_vm3, %v868_v31  ;;  %v983_v39 = vld [vmem:[#allocation3 + $0xa] sm:$0xff] }
  0xbc   : > { %2168 = vmatmul.msk.f32.vlgmr.msrb.gmra.mxu1 %vm862_vm3, %v982_v32  ;;  %1187 = vmatpush.msra.mxu0 %v2184_v30  ;;  %v2183_v31 = vld [vmem:[%s3482_s14 + $0x78] sm:$0xff]  ;;  %v2182_v32 = vld [vmem:[%s3482_s14 + $0x70] sm:$0xff]  ;;  %v2216_v30 = vld [vmem:[%s3475_s7 + $0x80] sm:$0xff] }
  0xbd   : > { %v847_v34 = vpop.f32.mrf.mxu2 }
  0xbe   : > { %v853_v35 = vadd.f32 %v847_v34, %v796_v33  ;;  %1188 = vmatpush.msra.mxu0 %v2183_v31  ;;  %v1123_v33 = vld [vmem:[%s3482_s14 + $0x8] sm:$0xff]  ;;  %v1332_v31 = vld [vmem:[%s3475_s7 + $0x20] sm:$0xff] }
  0xbf   : > { %v2181_v34 = vld [vmem:[%s3482_s14 + $0x68] sm:$0xff] }
  0xc0   : > { %v861_v36 = vadd.f32 %v2355_v11, %v853_v35  ;;  %1189 = vmatpush.msra.mxu0 %v2182_v32  ;;  %v1122_v35 = vld [vmem:[%s3482_s14] sm:$0xff] }
  0xc1   : > { %v885_v37 = vld [vmem:[#allocation3 + $0x19] sm:$0xff]  ;;  %v2232_v32 = vld [vmem:[%s3475_s7 + $0xe0] sm:$0xff] }
  0xc2   : > { %v869_v38 = vld [vmem:[#allocation3 + $0x18] sm:$0xff]  ;;  %866 = vst.msk [vmem:[#allocation3 + $0x21] sm:$0xff] %vm862_vm3, %v861_v36  ;;  %2150 = vmatmul.msk.f32.gmra.mxu3 %vm862_vm3, %v885_v37  ;;  %1190 = vmatpush.msra.mxu0 %v2181_v34  ;;  %v2180_v36 = vld [vmem:[%s3482_s14 + $0x60] sm:$0xff]  ;;  %v1331_v34 = vld [vmem:[%s3475_s7 + $0x18] sm:$0xff] }
  0xc3   : > { %2154 = vmatmul.msk.f32.gmra.mxu0 %vm862_vm3, %v869_v38 }
  0xc4   : > { %2169 = vmatmul.msk.f32.gmra.mxu1 %vm862_vm3, %v983_v39  ;;  %1191 = vmatpush.msra.mxu0 %v2180_v36  ;;  %v2214_v36 = vld [vmem:[%s3475_s7 + $0x70] sm:$0xff] }
  0xc9   : > { %v886_v40 = vld [vmem:[#allocation3 + $0x21] sm:$0xff] }
  0xca   : > { %v870_v41 = vld [vmem:[#allocation3 + $0x20] sm:$0xff]  ;;  %2151 = vmatmul.msk.f32.gmra.mxu3 %vm862_vm3, %v886_v40 }
  0xcb   : > { %v984_v42 = vld [vmem:[#allocation3 + $0x1a] sm:$0xff]  ;;  %2155 = vmatmul.msk.f32.gmra.mxu0 %vm862_vm3, %v870_v41  ;;  %v985_v43 = vld [vmem:[#allocation3 + $0x22] sm:$0xff] }
  0xcc   : > { %2170 = vmatmul.msk.f32.gmra.mxu1 %vm862_vm3, %v984_v42 }
  0xd4   : > { %2171 = vmatmul.msk.f32.gmra.mxu1 %vm862_vm3, %v985_v43  ;;  %v2199_v43 = vld [vmem:[%s3504_s27 + $0x58] sm:$0xff] }
 0x130   : > { %v970_v44 = vpop.f32.mrf.mxu0 }
 0x135   : > { %v929_v45 = vpop.f32.mrf.mxu3 }
 0x136   : > { %v971_v63 = vadd.f32 %v970_v44, %v929_v45  ;;  %v2209_v44 = vld [vmem:[%s3504_s27 + $0x88] sm:$0xff] }
 0x137   : > { %v1210_v45 = vld [vmem:[%s3504_s27 + $0x28] sm:$0xff] }
 0x138   : > { %v973_v47 = vpop.f32.mrf.mxu0  ;;  %1265 = vmatpush.msra.mxu1 %v1210_v45 }
 0x139   : > { %v1028_v46 = vpop.f32.mrf.mxu1 }
 0x13a   : > { %v1040_v7 = vadd.f32 %v1028_v46, %v971_v63  ;;  %v2198_v46 = vld [vmem:[%s3504_s27 + $0x50] sm:$0xff]  ;;  %v2239_v63 = vld [vmem:[%s3475_s7 + $0x118] sm:$0xff] }
 0x13c   : > { %v1048_v14 = vadd.f32 %v2356_v5, %v1040_v7  ;;  %v1336_v7 = vld [vmem:[%s3475_s7 + $0x40] sm:$0xff] }
 0x13d   : > { %v932_v48 = vpop.f32.mrf.mxu3 }
 0x13e   : > { %v974_v58 = vadd.f32 %v973_v47, %v932_v48  ;;  %v1052_v16 = vmax.f32 %v1048_v14, 0.0  ;;  %v2208_v47 = vld [vmem:[%s3504_s27 + $0x80] sm:$0xff] }
 0x13f   : > { %v1209_v48 = vld [vmem:[%s3504_s27 + $0x20] sm:$0xff] }
 0x140   : > { %v976_v50 = vpop.f32.mrf.mxu0  ;;  %1266 = vmatpush.msra.mxu1 %v1209_v48 }
 0x141   : > { %v1031_v49 = vpop.f32.mrf.mxu1 }
 0x142   : > { %v1041_v3 = vadd.f32 %v1031_v49, %v974_v58  ;;  %v2197_v49 = vld [vmem:[%s3504_s27 + $0x48] sm:$0xff]  ;;  %1267 = vmatpush.msra.mxu1 %v1208_v52  ;;  %v2194_v58 = vld [vmem:[%s3504_s27 + $0x30] sm:$0xff] }
 0x144   : > { %v1049_v12 = vadd.f32 %v2356_v5, %v1041_v3  ;;  %1268 = vmatpush.msra.mxu1 %v1207_v54  ;;  %v2221_v3 = vld [vmem:[%s3475_s7 + $0xa8] sm:$0xff] }
 0x145   : > { %v935_v51 = vpop.f32.mrf.mxu3 }
 0x146   : > { %v977_v56 = vadd.f32 %v976_v50, %v935_v51  ;;  %v1053_v15 = vmax.f32 %v1049_v12, 0.0  ;;  %v2196_v50 = vld [vmem:[%s3504_s27 + $0x40] sm:$0xff]  ;;  %v2207_v51 = vld [vmem:[%s3504_s27 + $0x78] sm:$0xff]  ;;  %1269 = vmatpush.msra.mxu1 %v1206_v57 }
 0x148   : > { %v979_v59 = vpop.f32.mrf.mxu0 }
 0x149   : > { %v1034_v53 = vpop.f32.mrf.mxu1 }
 0x14a   : > { %v1042_v0 = vadd.f32 %v1034_v53, %v977_v56  ;;  %v2206_v53 = vld [vmem:[%s3504_s27 + $0x70] sm:$0xff]  ;;  %v2205_v56 = vld [vmem:[%s3504_s27 + $0x68] sm:$0xff] }
 0x14c   : > { %v1050_v10 = vadd.f32 %v2356_v5, %v1042_v0  ;;  %v2222_v0 = vld [vmem:[%s3475_s7 + $0xb0] sm:$0xff] }
 0x14d   : > { %v938_v60 = vpop.f32.mrf.mxu3 }
 0x14e   : > { %v980_v62 = vadd.f32 %v979_v59, %v938_v60  ;;  %v1054_v13 = vmax.f32 %v1050_v10, 0.0  ;;  %v2204_v59 = vld [vmem:[%s3504_s27 + $0x60] sm:$0xff] }
 0x14f   : > { %v1205_v60 = vld [vmem:[%s3504_s27] sm:$0xff] }
 0x150   : > { %1270 = vmatpush.msra.mxu1 %v1205_v60 }
 0x151   : > { %v1037_v2 = vpop.f32.mrf.mxu1 }
 0x152   : > { %v1043_v4 = vadd.f32 %v1037_v2, %v980_v62  ;;  %v1339_v62 = vld [vmem:[%s3475_s7 + $0x58] sm:$0xff]  ;;  %v2238_v2 = vld [vmem:[%s3475_s7 + $0x110] sm:$0xff]  ;;  %1438 = vmatpush.msrb.mxu1 %v2239_v63 }
 0x153   : > { %1394 = vmatpush.msrb.mxu0 %v1339_v62 }
 0x154   : > { %v1051_v9 = vadd.f32 %v2356_v5, %v1043_v4  ;;  %v1337_v4 = vld [vmem:[%s3475_s7 + $0x48] sm:$0xff]  ;;  %1439 = vmatpush.msrb.mxu1 %v2238_v2  ;;  %v2269_v2 = vld [vmem:[%s3477_s9 + $0x118] sm:$0xff] }
 0x155   : > { %1395 = vmatpush.msrb.mxu0 %v1338_v1  ;;  %v2237_v5 = vld [vmem:[%s3475_s7 + $0x108] sm:$0xff]  ;;  %v1482_v1 = vld [vmem:[%s3477_s9 + $0x58] sm:$0xff] }
 0x156   : > { %v1055_v11 = vmax.f32 %v1051_v9, 0.0  ;;  %v2236_v9 = vld [vmem:[%s3475_s7 + $0x100] sm:$0xff]  ;;  %1440 = vmatpush.msrb.mxu1 %v2237_v5  ;;  %v2268_v5 = vld [vmem:[%s3477_s9 + $0x110] sm:$0xff] }
 0x157   : > { %1396 = vmatpush.msrb.mxu0 %v1337_v4  ;;  %v1481_v4 = vld [vmem:[%s3477_s9 + $0x50] sm:$0xff] }
 0x158   : > { %1077 = vmatpush.msrb.mxu2 %v1055_v11  ;;  %1109 = vmatpush.msrb.mxu3 %v1055_v11 }
 0x159   : > { %1397 = vmatpush.msrb.mxu0 %v1336_v7  ;;  %1441 = vmatpush.msrb.mxu1 %v2236_v9  ;;  %v1480_v7 = vld [vmem:[%s3477_s9 + $0x48] sm:$0xff] }
 0x15a   : > { %1078 = vmatpush.msrb.mxu2 %v1054_v13  ;;  %1110 = vmatpush.msrb.mxu3 %v1054_v13  ;;  %v2267_v9 = vld [vmem:[%s3477_s9 + $0x108] sm:$0xff] }
 0x15c   : > { %1079 = vmatpush.msrb.mxu2 %v1053_v15  ;;  %1111 = vmatpush.msrb.mxu3 %v1053_v15 }
 0x15e   : > { %1080 = vmatpush.msrb.mxu2 %v1052_v16  ;;  %1112 = vmatpush.msrb.mxu3 %v1052_v16 }
 0x15f   : > { %2172 = vmatmul.msk.f32.vlgmr.msrb.gmra.mxu2 %vm1058_vm4, %v1056_v17  ;;  %2176 = vmatmul.msk.f32.vlgmr.msrb.gmra.mxu3 %vm1058_vm4, %v2174_v18 }
 0x160   : > { %1144 = vmatpush.msra.mxu2 %v1133_v19  ;;  %1236 = vmatpush.msra.mxu3 %v2199_v43  ;;  %v1328_v43 = vld [vmem:[%s3475_s7] sm:$0xff] }
 0x162   : > { %1145 = vmatpush.msra.mxu2 %v1132_v8  ;;  %1237 = vmatpush.msra.mxu3 %v2198_v46 }
 0x164   : > { %1146 = vmatpush.msra.mxu2 %v1131_v20  ;;  %1238 = vmatpush.msra.mxu3 %v2197_v49  ;;  %v2357_v49 = vld [vmem:[%s3474_s6] ss:$0 sm:$0xff] }
 0x166   : > { %1147 = vmatpush.msra.mxu2 %v1130_v21  ;;  %1239 = vmatpush.msra.mxu3 %v2196_v50  ;;  %v2219_v21 = vld [vmem:[%s3475_s7 + $0x98] sm:$0xff] }
 0x167   : > { %2173 = vmatmul.msk.f32.gmra.mxu2 %vm1058_vm4, %v1057_v22  ;;  %2177 = vmatmul.msk.f32.gmra.mxu3 %vm1058_vm4, %v2175_v23  ;;  %v1335_v22 = vld [vmem:[%s3475_s7 + $0x38] sm:$0xff] }
 0x168   : > { %1148 = vmatpush.msra.mxu2 %v1129_v24  ;;  %1240 = vmatpush.msra.mxu3 %v2195_v55  ;;  %v2235_v23 = vld [vmem:[%s3475_s7 + $0xf8] sm:$0xff]  ;;  %v2218_v24 = vld [vmem:[%s3475_s7 + $0x90] sm:$0xff] }
 0x169   : > { %1398 = vmatpush.msrb.mxu0 %v1335_v22  ;;  %1442 = vmatpush.msrb.mxu1 %v2235_v23  ;;  %v1475_v22 = vld [vmem:[%s3477_s9 + $0x20] sm:$0xff] }
 0x16a   : > { %1149 = vmatpush.msra.mxu2 %v1128_v25  ;;  %1241 = vmatpush.msra.mxu3 %v2194_v58  ;;  %v1334_v25 = vld [vmem:[%s3475_s7 + $0x30] sm:$0xff]  ;;  %v2262_v23 = vld [vmem:[%s3477_s9 + $0xe0] sm:$0xff] }
 0x16b   : > { %1399 = vmatpush.msrb.mxu0 %v1334_v25  ;;  %v1474_v25 = vld [vmem:[%s3477_s9 + $0x18] sm:$0xff] }
 0x16c   : > { %1150 = vmatpush.msra.mxu2 %v1127_v26  ;;  %1365 = vmatpush.msrb.mxu3 %v2223_v61  ;;  %v2234_v26 = vld [vmem:[%s3475_s7 + $0xf0] sm:$0xff] }
 0x16d   : > { %1443 = vmatpush.msrb.mxu1 %v2234_v26  ;;  %v2261_v26 = vld [vmem:[%s3477_s9 + $0xd8] sm:$0xff] }
 0x16e   : > { %1151 = vmatpush.msra.mxu2 %v1126_v27  ;;  %1366 = vmatpush.msrb.mxu3 %v2222_v0  ;;  %v2217_v27 = vld [vmem:[%s3475_s7 + $0x88] sm:$0xff]  ;;  %v2253_v0 = vld [vmem:[%s3477_s9 + $0xb8] sm:$0xff] }
 0x170   : > { %1152 = vmatpush.msra.mxu2 %v1125_v28  ;;  %1367 = vmatpush.msrb.mxu3 %v2221_v3  ;;  %v1333_v28 = vld [vmem:[%s3475_s7 + $0x28] sm:$0xff]  ;;  %v2252_v3 = vld [vmem:[%s3477_s9 + $0xb0] sm:$0xff] }
 0x171   : > { %1400 = vmatpush.msrb.mxu0 %v1333_v28  ;;  %v1473_v28 = vld [vmem:[%s3477_s9 + $0x10] sm:$0xff] }
 0x172   : > { %1153 = vmatpush.msra.mxu2 %v1124_v29  ;;  %1368 = vmatpush.msrb.mxu3 %v2220_v6  ;;  %v2233_v29 = vld [vmem:[%s3475_s7 + $0xe8] sm:$0xff] }
 0x173   : > { %1444 = vmatpush.msrb.mxu1 %v2233_v29  ;;  %1401 = vmatpush.msrb.mxu0 %v1332_v31  ;;  %v2251_v6 = vld [vmem:[%s3477_s9 + $0xa8] sm:$0xff]  ;;  %v2260_v29 = vld [vmem:[%s3477_s9 + $0xd0] sm:$0xff] }
 0x174   : > { %1154 = vmatpush.msra.mxu2 %v1123_v33  ;;  %1369 = vmatpush.msrb.mxu3 %v2219_v21  ;;  %v2215_v33 = vld [vmem:[%s3475_s7 + $0x78] sm:$0xff]  ;;  %v2246_v21 = vld [vmem:[%s3477_s9 + $0x80] sm:$0xff]  ;;  %v1472_v31 = vld [vmem:[%s3477_s9 + $0x8] sm:$0xff] }
 0x175   : > { %1445 = vmatpush.msrb.mxu1 %v2232_v32  ;;  %1402 = vmatpush.msrb.mxu0 %v1331_v34  ;;  %v2259_v32 = vld [vmem:[%s3477_s9 + $0xc8] sm:$0xff]  ;;  %v1471_v34 = vld [vmem:[%s3477_s9] sm:$0xff] }
 0x176   : > { %1155 = vmatpush.msra.mxu2 %v1122_v35  ;;  %1370 = vmatpush.msrb.mxu3 %v2218_v24  ;;  %v2231_v35 = vld [vmem:[%s3475_s7 + $0xd8] sm:$0xff] }
 0x177   : > { %1446 = vmatpush.msrb.mxu1 %v2231_v35  ;;  %v2245_v24 = vld [vmem:[%s3477_s9 + $0x78] sm:$0xff]  ;;  %v2258_v35 = vld [vmem:[%s3477_s9 + $0xc0] sm:$0xff] }
 0x178   : > { %1303 = vmatpush.msrb.mxu2 %v2209_v44  ;;  %1371 = vmatpush.msrb.mxu3 %v2217_v27  ;;  %v2228_v44 = vld [vmem:[%s3475_s7 + $0xc0] sm:$0xff]  ;;  %v2244_v27 = vld [vmem:[%s3477_s9 + $0x70] sm:$0xff] }
 0x17a   : > { %1304 = vmatpush.msrb.mxu2 %v2208_v47  ;;  %1372 = vmatpush.msrb.mxu3 %v2216_v30  ;;  %v2243_v30 = vld [vmem:[%s3477_s9 + $0x68] sm:$0xff] }
 0x17c   : > { %1305 = vmatpush.msrb.mxu2 %v2207_v51  ;;  %1373 = vmatpush.msrb.mxu3 %v2215_v33  ;;  %v2242_v33 = vld [vmem:[%s3477_s9 + $0x60] sm:$0xff] }
 0x17e   : > { %1306 = vmatpush.msrb.mxu2 %v2206_v53  ;;  %1374 = vmatpush.msrb.mxu3 %v2214_v36  ;;  %v2283_v36 = vld [vmem:[%s3479_s11 + $0xb8] sm:$0xff] }
 0x180   : > { %1307 = vmatpush.msrb.mxu2 %v2205_v56 }
 0x182   : > { %1308 = vmatpush.msrb.mxu2 %v2204_v59 }
 0x1e2   : > { %v1082_v37 = vpop.f32.mrf.mxu2  ;;  %v1114_v38 = vpop.f32.mrf.mxu3 }
 0x1e3   : > { %v1120_v39 = vmax.f32 %v1082_v37, %v1114_v38  ;;  %v1330_v37 = vld [vmem:[%s3475_s7 + $0x10] sm:$0xff] }
 0x1e4   : > { %v2230_v38 = vld [vmem:[%s3475_s7 + $0xd0] sm:$0xff]  ;;  %1403 = vmatpush.msrb.mxu0 %v1330_v37  ;;  %v1623_v37 = vld [vmem:[%s3479_s11 + $0x58] sm:$0xff] }
 0x1e5   : > { %2178 = vmatmul.msk.f32.vlgmr.msra.gmra.mxu2 %vm862_vm3, %v1120_v39  ;;  %2192 = vmatmul.msk.f32.vlgmr.msra.gmra.mxu0 %vm862_vm3, %v1120_v39  ;;  %v2213_v39 = vld [vmem:[%s3475_s7 + $0x68] sm:$0xff] }
 0x1e6   : > { %1447 = vmatpush.msrb.mxu1 %v2230_v38  ;;  %1375 = vmatpush.msrb.mxu3 %v2213_v39  ;;  %v2299_v38 = vld [vmem:[%s3479_s11 + $0x118] sm:$0xff] }
 0x1e7   : > { %1508 = vmatpush.msra.mxu2 %v2253_v0  ;;  %v1621_v0 = vld [vmem:[%s3479_s11 + $0x48] sm:$0xff] }
 0x1e9   : > { %1509 = vmatpush.msra.mxu2 %v2252_v3  ;;  %v1620_v3 = vld [vmem:[%s3479_s11 + $0x40] sm:$0xff] }
 0x1ea   : > { %v1085_v40 = vpop.f32.mrf.mxu2  ;;  %v1117_v41 = vpop.f32.mrf.mxu3 }
 0x1eb   : > { %v1121_v42 = vmax.f32 %v1085_v40, %v1117_v41  ;;  %v1329_v40 = vld [vmem:[%s3475_s7 + $0x8] sm:$0xff]  ;;  %1510 = vmatpush.msra.mxu2 %v2251_v6  ;;  %v1619_v6 = vld [vmem:[%s3479_s11 + $0x38] sm:$0xff] }
 0x1ec   : > { %v2229_v41 = vld [vmem:[%s3475_s7 + $0xc8] sm:$0xff]  ;;  %1404 = vmatpush.msrb.mxu0 %v1329_v40 }
 0x1ed   : > { %2179 = vmatmul.msk.f32.gmra.mxu2 %vm862_vm3, %v1121_v42  ;;  %2193 = vmatmul.msk.f32.gmra.mxu0 %vm862_vm3, %v1121_v42  ;;  %v2212_v42 = vld [vmem:[%s3475_s7 + $0x60] sm:$0xff] }
 0x1ee   : > { %1448 = vmatpush.msrb.mxu1 %v2229_v41  ;;  %1376 = vmatpush.msrb.mxu3 %v2212_v42 }
 0x1ef   : > { %1405 = vmatpush.msrb.mxu0 %v1328_v43  ;;  %v2358_v43 = vld [vmem:[%s3476_s8] ss:$0 sm:$0xff] }
 0x1f0   : > { %1449 = vmatpush.msrb.mxu1 %v2228_v44 }
 0x1f1   : > { %1581 = vmatpush.msra.mxu0 %v2269_v2  ;;  %v2280_v2 = vld [vmem:[%s3479_s11 + $0xa0] sm:$0xff] }
 0x1f3   : > { %1582 = vmatpush.msra.mxu0 %v2268_v5  ;;  %v2279_v5 = vld [vmem:[%s3479_s11 + $0x98] sm:$0xff] }
 0x1f5   : > { %1583 = vmatpush.msra.mxu0 %v2267_v9  ;;  %v2278_v9 = vld [vmem:[%s3479_s11 + $0x90] sm:$0xff] }
 0x262   : > { %v1193_v10 = vpop.f32.mrf.mxu0 }
 0x268   : > { %v1157_v11 = vpop.f32.mrf.mxu2 }
 0x269   : > { %v1199_v12 = vmax.f32 %v1157_v11, %v1193_v10  ;;  %v2250_v10 = vld [vmem:[%s3477_s9 + $0xa0] sm:$0xff] }
 0x26a   : > { %v1196_v14 = vpop.f32.mrf.mxu0  ;;  %v1479_v11 = vld [vmem:[%s3477_s9 + $0x40] sm:$0xff]  ;;  %1511 = vmatpush.msra.mxu2 %v2250_v10  ;;  %v1618_v10 = vld [vmem:[%s3479_s11 + $0x30] sm:$0xff] }
 0x26b   : > { %1201 = vst.msk [vmem:[#allocation4 + $0x1] sm:$0xff] %vm690_vm1, %v1199_v12  ;;  %v2266_v12 = vld [vmem:[%s3477_s9 + $0x100] sm:$0xff] }
 0x26c   : > { %1584 = vmatpush.msra.mxu0 %v2266_v12  ;;  %v2277_v12 = vld [vmem:[%s3479_s11 + $0x88] sm:$0xff] }
 0x270   : > { %v1160_v13 = vpop.f32.mrf.mxu2 }
 0x271   : > { %v1200_v15 = vmax.f32 %v1160_v13, %v1196_v14  ;;  %v2249_v13 = vld [vmem:[%s3477_s9 + $0x98] sm:$0xff] }
 0x272   : > { %v1211_v16 = vld [vmem:[#allocation4 + $0x1] sm:$0xff]  ;;  %v1478_v14 = vld [vmem:[%s3477_s9 + $0x38] sm:$0xff]  ;;  %1512 = vmatpush.msra.mxu2 %v2249_v13 }
 0x273   : > { %v1278_v17 = vld [vmem:[#allocation4 + $0x2] sm:$0xff]  ;;  %1202 = vst.msk [vmem:[#allocation4 + $0x11] sm:$0xff] %vm690_vm1, %v1200_v15  ;;  %2200 = vmatmul.msk.f32.vlgmr.msra.gmra.mxu3 %vm690_vm1, %v1211_v16  ;;  %v2265_v15 = vld [vmem:[%s3477_s9 + $0xf8] sm:$0xff]  ;;  %v2248_v16 = vld [vmem:[%s3477_s9 + $0x90] sm:$0xff] }
 0x274   : > { %v1203_v18 = vld [vmem:[#allocation4] sm:$0xff]  ;;  %2210 = vmatmul.msk.f32.vlgmr.msrb.gmra.mxu2 %vm690_vm1, %v1278_v17  ;;  %1537 = vmatpush.msra.mxu3 %v1482_v1  ;;  %v1477_v17 = vld [vmem:[%s3477_s9 + $0x30] sm:$0xff]  ;;  %v2297_v1 = vld [vmem:[%s3479_s11 + $0x108] sm:$0xff] }
 0x275   : > { %2202 = vmatmul.msk.f32.vlgmr.msra.gmra.mxu1 %vm690_vm1, %v1203_v18  ;;  %1585 = vmatpush.msra.mxu0 %v2265_v15  ;;  %v2264_v18 = vld [vmem:[%s3477_s9 + $0xf0] sm:$0xff]  ;;  %v1617_v13 = vld [vmem:[%s3479_s11 + $0x28] sm:$0xff]  ;;  %v2276_v15 = vld [vmem:[%s3479_s11 + $0x80] sm:$0xff] }
 0x276   : > { %1538 = vmatpush.msra.mxu3 %v1481_v4  ;;  %1513 = vmatpush.msra.mxu2 %v2248_v16  ;;  %v2296_v4 = vld [vmem:[%s3479_s11 + $0x100] sm:$0xff] }
 0x277   : > { %1586 = vmatpush.msra.mxu0 %v2264_v18  ;;  %1649 = vmatpush.msra.mxu1 %v2283_v36  ;;  %v1616_v16 = vld [vmem:[%s3479_s11 + $0x20] sm:$0xff]  ;;  %v2275_v18 = vld [vmem:[%s3479_s11 + $0x78] sm:$0xff] }
 0x278   : > { %1539 = vmatpush.msra.mxu3 %v1480_v7  ;;  %v2295_v7 = vld [vmem:[%s3479_s11 + $0xf8] sm:$0xff] }
 0x27a   : > { %v1212_v19 = vld [vmem:[#allocation4 + $0x11] sm:$0xff]  ;;  %1540 = vmatpush.msra.mxu3 %v1479_v11 }
 0x27b   : > { %v1279_v8 = vld [vmem:[#allocation4 + $0x12] sm:$0xff]  ;;  %2201 = vmatmul.msk.f32.gmra.mxu3 %vm690_vm1, %v1212_v19  ;;  %v2247_v19 = vld [vmem:[%s3477_s9 + $0x88] sm:$0xff] }
 0x27c   : > { %v1204_v20 = vld [vmem:[#allocation4 + $0x10] sm:$0xff]  ;;  %2211 = vmatmul.msk.f32.gmra.mxu2 %vm690_vm1, %v1279_v8  ;;  %1541 = vmatpush.msra.mxu3 %v1478_v14  ;;  %v1476_v8 = vld [vmem:[%s3477_s9 + $0x28] sm:$0xff] }
 0x27d   : > { %2203 = vmatmul.msk.f32.gmra.mxu1 %vm690_vm1, %v1204_v20  ;;  %v2263_v20 = vld [vmem:[%s3477_s9 + $0xe8] sm:$0xff]  ;;  %1514 = vmatpush.msra.mxu2 %v2247_v19  ;;  %v2294_v11 = vld [vmem:[%s3479_s11 + $0xf0] sm:$0xff]  ;;  %v1615_v19 = vld [vmem:[%s3479_s11 + $0x18] sm:$0xff] }
 0x27e   : > { %1542 = vmatpush.msra.mxu3 %v1477_v17  ;;  %1587 = vmatpush.msra.mxu0 %v2263_v20  ;;  %v2293_v14 = vld [vmem:[%s3479_s11 + $0xe8] sm:$0xff]  ;;  %v2292_v17 = vld [vmem:[%s3479_s11 + $0xe0] sm:$0xff]  ;;  %v2274_v20 = vld [vmem:[%s3479_s11 + $0x70] sm:$0xff] }
 0x27f   : > { %1515 = vmatpush.msra.mxu2 %v2246_v21  ;;  %v1614_v21 = vld [vmem:[%s3479_s11 + $0x10] sm:$0xff] }
 0x280   : > { %1543 = vmatpush.msra.mxu3 %v1476_v8  ;;  %1588 = vmatpush.msra.mxu0 %v2262_v23  ;;  %v2291_v8 = vld [vmem:[%s3479_s11 + $0xd8] sm:$0xff]  ;;  %v2273_v23 = vld [vmem:[%s3479_s11 + $0x68] sm:$0xff] }
 0x281   : > { %1516 = vmatpush.msra.mxu2 %v2245_v24  ;;  %v1613_v24 = vld [vmem:[%s3479_s11 + $0x8] sm:$0xff] }
 0x282   : > { %1544 = vmatpush.msra.mxu3 %v1475_v22  ;;  %1589 = vmatpush.msra.mxu0 %v2261_v26  ;;  %v2290_v22 = vld [vmem:[%s3479_s11 + $0xd0] sm:$0xff]  ;;  %v2272_v26 = vld [vmem:[%s3479_s11 + $0x60] sm:$0xff] }
 0x283   : > { %1517 = vmatpush.msra.mxu2 %v2244_v27  ;;  %v1612_v27 = vld [vmem:[%s3479_s11] sm:$0xff] }
 0x284   : > { %1545 = vmatpush.msra.mxu3 %v1474_v25  ;;  %1590 = vmatpush.msra.mxu0 %v2260_v29  ;;  %v2289_v25 = vld [vmem:[%s3479_s11 + $0xc8] sm:$0xff] }
 0x285   : > { %1518 = vmatpush.msra.mxu2 %v2243_v30 }
 0x286   : > { %1546 = vmatpush.msra.mxu3 %v1473_v28  ;;  %1591 = vmatpush.msra.mxu0 %v2259_v32  ;;  %v2288_v28 = vld [vmem:[%s3479_s11 + $0xc0] sm:$0xff] }
 0x287   : > { %1519 = vmatpush.msra.mxu2 %v2242_v33  ;;  %v2359_v33 = vld [vmem:[%s3478_s10] ss:$0 sm:$0xff] }
 0x288   : > { %1547 = vmatpush.msra.mxu3 %v1472_v31  ;;  %1592 = vmatpush.msra.mxu0 %v2258_v35 }
 0x289   : > { %1678 = vmatpush.msrb.mxu2 %v1623_v37 }
 0x28a   : > { %1548 = vmatpush.msra.mxu3 %v1471_v34 }
 0x2f2   : > { %v1272_v45 = vpop.f32.mrf.mxu1 }
 0x2f6   : > { %v1243_v46 = vpop.f32.mrf.mxu3 }
 0x2f7   : > { %v1310_v47 = vpop.f32.mrf.mxu2  ;;  %v1273_v48 = vadd.f32 %v1272_v45, %v1243_v46 }
 0x2f9   : > { %v1316_v50 = vadd.f32 %v1310_v47, %v1273_v48 }
 0x2fa   : > { %v1275_v53 = vpop.f32.mrf.mxu1 }
 0x2fb   : > { %v1322_v51 = vadd.f32 %v2357_v49, %v1316_v50 }
 0x2fd   : > { %1324 = vst.msk [vmem:[#allocation5 + $0x1] sm:$0xff] %vm862_vm3, %v1322_v51 }
 0x2fe   : > { %v1246_v52 = vpop.f32.mrf.mxu3 }
 0x2ff   : > { %v1276_v54 = vadd.f32 %v1275_v53, %v1246_v52  ;;  %v1313_v55 = vpop.f32.mrf.mxu2 }
 0x301   : > { %v1317_v56 = vadd.f32 %v1313_v55, %v1276_v54 }
 0x303   : > { %v1323_v57 = vadd.f32 %v2357_v49, %v1317_v56 }
 0x304   : > { %v1340_v58 = vld [vmem:[#allocation5 + $0x1] sm:$0xff] }
 0x305   : > { %v1326_v59 = vld [vmem:[#allocation5] sm:$0xff]  ;;  %1325 = vst.msk [vmem:[#allocation5 + $0x11] sm:$0xff] %vm862_vm3, %v1323_v57  ;;  %2224 = vmatmul.msk.f32.vlgmr.msrb.gmra.mxu3 %vm862_vm3, %v1340_v58 }
 0x306   : > { %v1413_v60 = vld [vmem:[#allocation5 + $0x2] sm:$0xff]  ;;  %2226 = vmatmul.msk.f32.vlgmr.msrb.gmra.mxu0 %vm862_vm3, %v1326_v59  ;;  %1722 = vmatpush.msrb.mxu3 %v2299_v38 }
 0x307   : > { %2240 = vmatmul.msk.f32.vlgmr.msrb.gmra.mxu1 %vm862_vm3, %v1413_v60  ;;  %v2282_v60 = vld [vmem:[%s3479_s11 + $0xb0] sm:$0xff] }
 0x308   : > { %1650 = vmatpush.msra.mxu1 %v2282_v60  ;;  %v1808_v60 = vld [vmem:[%s3484_s16 + $0x30] sm:$0xff] }
 0x30c   : > { %v1341_v61 = vld [vmem:[#allocation5 + $0x11] sm:$0xff] }
 0x30d   : > { %v1327_v62 = vld [vmem:[#allocation5 + $0x10] sm:$0xff]  ;;  %2225 = vmatmul.msk.f32.gmra.mxu3 %vm862_vm3, %v1341_v61 }
 0x30e   : > { %v1414_v63 = vld [vmem:[#allocation5 + $0x12] sm:$0xff]  ;;  %2227 = vmatmul.msk.f32.gmra.mxu0 %vm862_vm3, %v1327_v62 }
 0x30f   : > { %2241 = vmatmul.msk.f32.gmra.mxu1 %vm862_vm3, %v1414_v63  ;;  %v1622_v61 = vld [vmem:[%s3479_s11 + $0x50] sm:$0xff]  ;;  %v2281_v63 = vld [vmem:[%s3479_s11 + $0xa8] sm:$0xff] }
 0x310   : > { %v2298_v62 = vld [vmem:[%s3479_s11 + $0x110] sm:$0xff]  ;;  %1679 = vmatpush.msrb.mxu2 %v1622_v61  ;;  %1651 = vmatpush.msra.mxu1 %v2281_v63 }
 0x311   : > { %1723 = vmatpush.msrb.mxu3 %v2298_v62 }
 0x312   : > { %1680 = vmatpush.msrb.mxu2 %v1621_v0  ;;  %1652 = vmatpush.msra.mxu1 %v2280_v2  ;;  %v2360_v0 = vld [vmem:[%s3480_s12] ss:$0 sm:$0xff] }
 0x313   : > { %1724 = vmatpush.msrb.mxu3 %v2297_v1 }
 0x314   : > { %1681 = vmatpush.msrb.mxu2 %v1620_v3  ;;  %1653 = vmatpush.msra.mxu1 %v2279_v5 }
 0x315   : > { %1725 = vmatpush.msrb.mxu3 %v2296_v4 }
 0x316   : > { %1682 = vmatpush.msrb.mxu2 %v1619_v6  ;;  %1654 = vmatpush.msra.mxu1 %v2278_v9  ;;  %v1751_v9 = vld [vmem:[%s3483_s15] sm:$0xff] }
 0x317   : > { %1726 = vmatpush.msrb.mxu3 %v2295_v7 }
 0x318   : > { %1683 = vmatpush.msrb.mxu2 %v1618_v10  ;;  %1655 = vmatpush.msra.mxu1 %v2277_v12  ;;  %v2303_v10 = vld [vmem:[%s3483_s15 + $0x8] sm:$0xff]  ;;  %v2313_v12 = vld [vmem:[%s3484_s16 + $0x98] sm:$0xff] }
 0x319   : > { %1727 = vmatpush.msrb.mxu3 %v2294_v11  ;;  %v2314_v11 = vld [vmem:[%s3484_s16 + $0xa0] sm:$0xff] }
 0x31a   : > { %1684 = vmatpush.msrb.mxu2 %v1617_v13  ;;  %1656 = vmatpush.msra.mxu1 %v2276_v15  ;;  %v2312_v13 = vld [vmem:[%s3484_s16 + $0x90] sm:$0xff]  ;;  %v2311_v15 = vld [vmem:[%s3484_s16 + $0x88] sm:$0xff] }
 0x31b   : > { %1728 = vmatpush.msrb.mxu3 %v2293_v14  ;;  %v1807_v14 = vld [vmem:[%s3484_s16 + $0x28] sm:$0xff] }
 0x31c   : > { %1685 = vmatpush.msrb.mxu2 %v1616_v16  ;;  %1657 = vmatpush.msra.mxu1 %v2275_v18  ;;  %v1806_v16 = vld [vmem:[%s3484_s16 + $0x20] sm:$0xff] }
 0x31d   : > { %1729 = vmatpush.msrb.mxu3 %v2292_v17  ;;  %v1805_v17 = vld [vmem:[%s3484_s16 + $0x18] sm:$0xff]  ;;  %v2310_v18 = vld [vmem:[%s3484_s16 + $0x80] sm:$0xff] }
 0x31e   : > { %1686 = vmatpush.msrb.mxu2 %v1615_v19  ;;  %1658 = vmatpush.msra.mxu1 %v2274_v20  ;;  %v1804_v19 = vld [vmem:[%s3484_s16 + $0x10] sm:$0xff] }
 0x31f   : > { %1730 = vmatpush.msrb.mxu3 %v2291_v8  ;;  %v2309_v8 = vld [vmem:[%s3484_s16 + $0x78] sm:$0xff]  ;;  %v2308_v20 = vld [vmem:[%s3484_s16 + $0x70] sm:$0xff] }
 0x320   : > { %1687 = vmatpush.msrb.mxu2 %v1614_v21  ;;  %1659 = vmatpush.msra.mxu1 %v2273_v23  ;;  %v1803_v21 = vld [vmem:[%s3484_s16 + $0x8] sm:$0xff]  ;;  %v1802_v23 = vld [vmem:[%s3484_s16] sm:$0xff] }
 0x321   : > { %1731 = vmatpush.msrb.mxu3 %v2290_v22  ;;  %v2307_v22 = vld [vmem:[%s3484_s16 + $0x68] sm:$0xff] }
 0x322   : > { %1688 = vmatpush.msrb.mxu2 %v1613_v24  ;;  %1660 = vmatpush.msra.mxu1 %v2272_v26  ;;  %v2306_v24 = vld [vmem:[%s3484_s16 + $0x60] sm:$0xff]  ;;  %v2323_v26 = vld [vmem:[%s3485_s17 + $0x50] sm:$0xff] }
 0x323   : > { %1732 = vmatpush.msrb.mxu3 %v2289_v25  ;;  %v2324_v25 = vld [vmem:[%s3485_s17 + $0x58] sm:$0xff] }
 0x324   : > { %1689 = vmatpush.msrb.mxu2 %v1612_v27 }
 0x325   : > { %1733 = vmatpush.msrb.mxu3 %v2288_v28 }
 0x383   : > { %v1407_v39 = vpop.f32.mrf.mxu0 }
 0x384   : > { %v1451_v40 = vpop.f32.mrf.mxu1 }
 0x388   : > { %v1378_v41 = vpop.f32.mrf.mxu3 }
 0x389   : > { %v1408_v42 = vadd.f32 %v1407_v39, %v1378_v41 }
 0x38b   : > { %v1457_v44 = vadd.f32 %v1451_v40, %v1408_v42  ;;  %v1410_v47 = vpop.f32.mrf.mxu0 }
 0x38c   : > { %v1454_v50 = vpop.f32.mrf.mxu1 }
 0x38d   : > { %v1463_v45 = vadd.f32 %v2358_v43, %v1457_v44 }
 0x38f   : > { %v1465_v46 = vmax.f32 %v1463_v45, 0.0 }
 0x390   : > { %v1381_v48 = vpop.f32.mrf.mxu3 }
 0x391   : > { %1467 = vst.msk [vmem:[#allocation6 + $0x1] sm:$0xff] %vm862_vm3, %v1465_v46  ;;  %v1411_v49 = vadd.f32 %v1410_v47, %v1381_v48  ;;  %v1813_v48 = vld [vmem:[%s3484_s16 + $0x58] sm:$0xff] }
 0x393   : > { %v1458_v51 = vadd.f32 %v1454_v50, %v1411_v49  ;;  %v1812_v49 = vld [vmem:[%s3484_s16 + $0x50] sm:$0xff] }
 0x395   : > { %v1464_v52 = vadd.f32 %v2358_v43, %v1458_v51  ;;  %v2317_v51 = vld [vmem:[%s3484_s16 + $0xb8] sm:$0xff] }
 0x396   : > { %1854 = vmatpush.msrb.mxu0 %v2317_v51  ;;  %v2327_v51 = vld [vmem:[%s3485_s17 + $0x60] sm:$0xff] }
 0x397   : > { %v1466_v53 = vmax.f32 %v1464_v52, 0.0  ;;  %v1811_v52 = vld [vmem:[%s3484_s16 + $0x48] sm:$0xff] }
 0x398   : > { %v1483_v54 = vld [vmem:[#allocation6 + $0x1] sm:$0xff] }
 0x399   : > { %v1469_v55 = vld [vmem:[#allocation6] sm:$0xff]  ;;  %1468 = vst.msk [vmem:[#allocation6 + $0x11] sm:$0xff] %vm862_vm3, %v1466_v53  ;;  %2254 = vmatmul.msk.f32.vlgmr.msra.gmra.mxu2 %vm862_vm3, %v1483_v54  ;;  %v2316_v53 = vld [vmem:[%s3484_s16 + $0xb0] sm:$0xff] }
 0x39a   : > { %v1556_v56 = vld [vmem:[#allocation6 + $0x2] sm:$0xff]  ;;  %2256 = vmatmul.msk.f32.vlgmr.msra.gmra.mxu3 %vm862_vm3, %v1469_v55  ;;  %1821 = vmatpush.msra.mxu2 %v1813_v48  ;;  %v2330_v48 = vld [vmem:[%s3485_s17 + $0x78] sm:$0xff] }
 0x39b   : > { %2270 = vmatmul.msk.f32.vlgmr.msra.gmra.mxu0 %vm862_vm3, %v1556_v56  ;;  %v2315_v55 = vld [vmem:[%s3484_s16 + $0xa8] sm:$0xff] }
 0x39c   : > { %1822 = vmatpush.msra.mxu2 %v1812_v49  ;;  %1855 = vmatpush.msrb.mxu0 %v2316_v53  ;;  %v2329_v49 = vld [vmem:[%s3485_s17 + $0x70] sm:$0xff]  ;;  %v2014_v53 = vld [vmem:[%s3487_s19 + $0x58] sm:$0xff] }
 0x39e   : > { %1823 = vmatpush.msra.mxu2 %v1811_v52  ;;  %1856 = vmatpush.msrb.mxu0 %v2315_v55  ;;  %v2015_v52 = vld [vmem:[%s3487_s19 + $0x60] sm:$0xf]  ;;  %v2012_v55 = vld [vmem:[%s3487_s19 + $0x48] sm:$0xff] }
 0x39f   : > { %2341 = vmatpush.msk.msra.mxu3 %vm2024_vm6, %v2015_v52 }
 0x3a0   : > { %v1484_v57 = vld [vmem:[#allocation6 + $0x11] sm:$0xff]  ;;  %1857 = vmatpush.msrb.mxu0 %v2314_v11 }
 0x3a1   : > { %v1470_v58 = vld [vmem:[#allocation6 + $0x10] sm:$0xff]  ;;  %2255 = vmatmul.msk.f32.gmra.mxu2 %vm862_vm3, %v1484_v57  ;;  %v1810_v57 = vld [vmem:[%s3484_s16 + $0x40] sm:$0xff]  ;;  %2032 = vmatpush.msra.mxu3 %v2014_v53 }
 0x3a2   : > { %v1557_v59 = vld [vmem:[#allocation6 + $0x12] sm:$0xff]  ;;  %2257 = vmatmul.msk.f32.gmra.mxu3 %vm862_vm3, %v1470_v58  ;;  %1824 = vmatpush.msra.mxu2 %v1810_v57 }
 0x3a3   : > { %2271 = vmatmul.msk.f32.gmra.mxu0 %vm862_vm3, %v1557_v59  ;;  %v1809_v58 = vld [vmem:[%s3484_s16 + $0x38] sm:$0xff] }
 0x3a4   : > { %1825 = vmatpush.msra.mxu2 %v1809_v58  ;;  %1858 = vmatpush.msrb.mxu0 %v2313_v12 }
 0x3a6   : > { %1826 = vmatpush.msra.mxu2 %v1808_v60  ;;  %1859 = vmatpush.msrb.mxu0 %v2312_v13 }
 0x3a8   : > { %1827 = vmatpush.msra.mxu2 %v1807_v14  ;;  %1860 = vmatpush.msrb.mxu0 %v2311_v15  ;;  %v2361_v14 = vld [vmem:[%s3486_s18] ss:$0 sm:$0xff] }
 0x3aa   : > { %1828 = vmatpush.msra.mxu2 %v1806_v16  ;;  %1861 = vmatpush.msrb.mxu0 %v2310_v18 }
 0x3ac   : > { %1829 = vmatpush.msra.mxu2 %v1805_v17  ;;  %1862 = vmatpush.msrb.mxu0 %v2309_v8 }
 0x3ae   : > { %1830 = vmatpush.msra.mxu2 %v1804_v19  ;;  %1863 = vmatpush.msrb.mxu0 %v2308_v20  ;;  %v2362_v19 = vld [vmem:[%s3488_s20] ss:$0 sm:$0xff] }
 0x3b0   : > { %1831 = vmatpush.msra.mxu2 %v1803_v21  ;;  %1864 = vmatpush.msrb.mxu0 %v2307_v22 }
 0x3b2   : > { %1832 = vmatpush.msra.mxu2 %v1802_v23  ;;  %1865 = vmatpush.msrb.mxu0 %v2306_v24 }
 0x418   : > { %v1594_v29 = vpop.f32.mrf.mxu0 }
 0x41c   : > { %v1521_v30 = vpop.f32.mrf.mxu2 }
 0x41d   : > { %v1550_v31 = vpop.f32.mrf.mxu3 }
 0x41e   : > { %v1551_v32 = vadd.f32 %v1550_v31, %v1521_v30  ;;  %v2339_v30 = vld [vmem:[%s3485_s17 + $0xb8] sm:$0xff]  ;;  %v1878_v31 = vld [vmem:[%s3485_s17 + $0x28] sm:$0xff] }
 0x41f   : > { %1923 = vmatpush.msra.mxu0 %v1878_v31 }
 0x420   : > { %v1600_v34 = vadd.f32 %v1594_v29, %v1551_v32  ;;  %v1597_v39 = vpop.f32.mrf.mxu0  ;;  %v2322_v32 = vld [vmem:[%s3485_s17 + $0x48] sm:$0xff] }
 0x422   : > { %v1606_v35 = vadd.f32 %v2359_v33, %v1600_v34  ;;  %v1877_v34 = vld [vmem:[%s3485_s17 + $0x20] sm:$0xff] }
 0x423   : > { %1924 = vmatpush.msra.mxu0 %v1877_v34 }
 0x424   : > { %1608 = vst.msk [vmem:[#allocation7 + $0x1] sm:$0xff] %vm862_vm3, %v1606_v35  ;;  %v1524_v36 = vpop.f32.mrf.mxu2  ;;  %v2321_v35 = vld [vmem:[%s3485_s17 + $0x40] sm:$0xff] }
 0x425   : > { %v1553_v37 = vpop.f32.mrf.mxu3 }
 0x426   : > { %v1554_v38 = vadd.f32 %v1553_v37, %v1524_v36  ;;  %v2320_v36 = vld [vmem:[%s3485_s17 + $0x38] sm:$0xff]  ;;  %v2319_v37 = vld [vmem:[%s3485_s17 + $0x30] sm:$0xff] }
 0x428   : > { %v1601_v40 = vadd.f32 %v1597_v39, %v1554_v38  ;;  %v2337_v38 = vld [vmem:[%s3485_s17 + $0xa8] sm:$0xff]  ;;  %v1876_v39 = vld [vmem:[%s3485_s17 + $0x18] sm:$0xff] }
 0x429   : > { %1925 = vmatpush.msra.mxu0 %v1876_v39 }
 0x42a   : > { %v1607_v41 = vadd.f32 %v2359_v33, %v1601_v40  ;;  %v2338_v33 = vld [vmem:[%s3485_s17 + $0xb0] sm:$0xff]  ;;  %v2332_v40 = vld [vmem:[%s3485_s17 + $0x88] sm:$0xff] }
 0x42b   : > { %v1624_v42 = vld [vmem:[#allocation7 + $0x1] sm:$0xff] }
 0x42c   : > { %v1610_v43 = vld [vmem:[#allocation7] sm:$0xff]  ;;  %1609 = vst.msk [vmem:[#allocation7 + $0x11] sm:$0xff] %vm862_vm3, %v1607_v41  ;;  %2284 = vmatmul.msk.f32.vlgmr.msra.gmra.mxu1 %vm862_vm3, %v1624_v42  ;;  %v1875_v42 = vld [vmem:[%s3485_s17 + $0x10] sm:$0xff] }
 0x42d   : > { %v1697_v44 = vld [vmem:[#allocation7 + $0x2] sm:$0xff]  ;;  %2286 = vmatmul.msk.f32.vlgmr.msrb.gmra.mxu2 %vm862_vm3, %v1610_v43  ;;  %1926 = vmatpush.msra.mxu0 %v1875_v42 }
 0x42e   : > { %2300 = vmatmul.msk.f32.vlgmr.msrb.gmra.mxu3 %vm862_vm3, %v1697_v44  ;;  %1986 = vmatpush.msrb.mxu2 %v2339_v30  ;;  %v2336_v41 = vld [vmem:[%s3485_s17 + $0xa0] sm:$0xff]  ;;  %v2335_v44 = vld [vmem:[%s3485_s17 + $0x98] sm:$0xff] }
 0x42f   : > { %v2331_v43 = vld [vmem:[%s3485_s17 + $0x80] sm:$0xff] }
 0x430   : > { %1987 = vmatpush.msrb.mxu2 %v2338_v33 }
 0x432   : > { %1988 = vmatpush.msrb.mxu2 %v2337_v38 }
 0x433   : > { %v1625_v45 = vld [vmem:[#allocation7 + $0x11] sm:$0xff] }
 0x434   : > { %v1611_v46 = vld [vmem:[#allocation7 + $0x10] sm:$0xff]  ;;  %2285 = vmatmul.msk.f32.gmra.mxu1 %vm862_vm3, %v1625_v45  ;;  %1989 = vmatpush.msrb.mxu2 %v2336_v41  ;;  %v1874_v45 = vld [vmem:[%s3485_s17 + $0x8] sm:$0xff] }
 0x435   : > { %v1698_v47 = vld [vmem:[#allocation7 + $0x12] sm:$0xff]  ;;  %2287 = vmatmul.msk.f32.gmra.mxu2 %vm862_vm3, %v1611_v46  ;;  %1927 = vmatpush.msra.mxu0 %v1874_v45 }
 0x436   : > { %2301 = vmatmul.msk.f32.gmra.mxu3 %vm862_vm3, %v1698_v47  ;;  %1990 = vmatpush.msrb.mxu2 %v2335_v44  ;;  %v2334_v46 = vld [vmem:[%s3485_s17 + $0x90] sm:$0xff]  ;;  %v1873_v47 = vld [vmem:[%s3485_s17] sm:$0xff] }
 0x437   : > { %1928 = vmatpush.msra.mxu0 %v1873_v47 }
 0x438   : > { %1991 = vmatpush.msrb.mxu2 %v2334_v46 }
 0x4a9   : > { %v1662_v50 = vpop.f32.mrf.mxu1 }
 0x4b0   : > { %v1691_v54 = vpop.f32.mrf.mxu2 }
 0x4b1   : > { %v1735_v56 = vpop.f32.mrf.mxu3  ;;  %v1692_v59 = vadd.f32 %v1691_v54, %v1662_v50  ;;  %v1665_v61 = vpop.f32.mrf.mxu1  ;;  %v2328_v50 = vld [vmem:[%s3485_s17 + $0x68] sm:$0xff]  ;;  %v2013_v54 = vld [vmem:[%s3487_s19 + $0x50] sm:$0xff] }
 0x4b2   : > { %2033 = vmatpush.msra.mxu3 %v2013_v54 }
 0x4b3   : > { %v1741_v63 = vadd.f32 %v1735_v56, %v1692_v59 }
 0x4b4   : > { %2034 = vmatpush.msra.mxu3 %v2012_v55 }
 0x4b5   : > { %v1747_v4 = vadd.f32 %v2360_v0, %v1741_v63  ;;  %v2011_v63 = vld [vmem:[%s3487_s19 + $0x40] sm:$0xff] }
 0x4b6   : > { %2035 = vmatpush.msra.mxu3 %v2011_v63 }
 0x4b7   : > { %v1749_v7 = vmax.f32 %v1747_v4, 0.0  ;;  %v2006_v4 = vld [vmem:[%s3487_s19 + $0x18] sm:$0xff] }
 0x4b8   : > { %v1694_v62 = vpop.f32.mrf.mxu2 }
 0x4b9   : > { %v1695_v1 = vadd.f32 %v1694_v62, %v1665_v61  ;;  %v1738_v2 = vpop.f32.mrf.mxu3 }
 0x4bb   : > { %v1742_v3 = vadd.f32 %v1738_v2, %v1695_v1  ;;  %v2009_v1 = vld [vmem:[%s3487_s19 + $0x30] sm:$0xff]  ;;  %v2008_v2 = vld [vmem:[%s3487_s19 + $0x28] sm:$0xff] }
 0x4bd   : > { %v1748_v5 = vadd.f32 %v2360_v0, %v1742_v3  ;;  %v2010_v0 = vld [vmem:[%s3487_s19 + $0x38] sm:$0xff]  ;;  %v2007_v3 = vld [vmem:[%s3487_s19 + $0x20] sm:$0xff] }
 0x4be   : > { %2036 = vmatpush.msra.mxu3 %v2010_v0 }
 0x4bf   : > { %v1750_v6 = vmax.f32 %v1748_v5, 0.0  ;;  %v2005_v5 = vld [vmem:[%s3487_s19 + $0x10] sm:$0xff] }
 0x4c0   : > { %2037 = vmatpush.msra.mxu3 %v2009_v1 }
 0x4c1   : > { %1770 = vmatpush.msrb.mxu1 %v1750_v6 }
 0x4c2   : > { %2038 = vmatpush.msra.mxu3 %v2008_v2 }
 0x4c3   : > { %1771 = vmatpush.msrb.mxu1 %v1749_v7 }
 0x4c4   : > { %2302 = vmatmul.msk.f32.vlgmr.msrb.gmra.mxu1 %vm1752_vm5, %v1751_v9  ;;  %2039 = vmatpush.msra.mxu3 %v2007_v3 }
 0x4c5   : > { %1795 = vmatpush.msra.mxu1 %v1750_v6  ;;  %v2004_v6 = vld [vmem:[%s3487_s19 + $0x8] sm:$0xff] }
 0x4c6   : > { %2040 = vmatpush.msra.mxu3 %v2006_v4 }
 0x4c7   : > { %1796 = vmatpush.msra.mxu1 %v1749_v7  ;;  %v2003_v7 = vld [vmem:[%s3487_s19] sm:$0xff] }
 0x4c8   : > { %2041 = vmatpush.msra.mxu3 %v2005_v5 }
 0x4c9   : > { %1900 = vmatpush.msrb.mxu1 %v2324_v25 }
 0x4ca   : > { %2042 = vmatpush.msra.mxu3 %v2004_v6 }
 0x4cb   : > { %1901 = vmatpush.msrb.mxu1 %v2323_v26 }
 0x4cc   : > { %2304 = vmatmul.msk.f32.vlgmr.msra.gmra.mxu1 %vm1752_vm5, %v2303_v10  ;;  %2043 = vmatpush.msra.mxu3 %v2003_v7 }
 0x4cd   : > { %1902 = vmatpush.msrb.mxu1 %v2322_v32 }
 0x4cf   : > { %1903 = vmatpush.msrb.mxu1 %v2321_v35 }
 0x4d1   : > { %1904 = vmatpush.msrb.mxu1 %v2320_v36 }
 0x4d3   : > { %1905 = vmatpush.msrb.mxu1 %v2319_v37 }
 0x4d5   : > { %1954 = vmatpush.msra.mxu1 %v2332_v40 }
 0x4d7   : > { %1955 = vmatpush.msra.mxu1 %v2331_v43 }
 0x4d9   : > { %1956 = vmatpush.msra.mxu1 %v2330_v48 }
 0x4db   : > { %1957 = vmatpush.msra.mxu1 %v2329_v49 }
 0x4dd   : > { %1958 = vmatpush.msra.mxu1 %v2328_v50 }
 0x4df   : > { %1959 = vmatpush.msra.mxu1 %v2327_v51 }
 0x541   : > { %v1773_v27 = vpop.f32.mrf.mxu1 }
 0x549   : > { %v1798_v28 = vpop.f32.mrf.mxu1 }
 0x54a   : > { %v1801_v29 = vmax.f32 %v1773_v27, %v1798_v28 }
 0x54c   : > { %2305 = vmatmul.msk.f32.vlgmr.msra.gmra.mxu2 %vm862_vm3, %v1801_v29  ;;  %2318 = vmatmul.msk.f32.vlgmr.msrb.gmra.mxu0 %vm862_vm3, %v1801_v29 }
 0x5c9   : > { %v1867_v57 = vpop.f32.mrf.mxu0 }
 0x5cf   : > { %v1834_v56 = vpop.f32.mrf.mxu2 }
 0x5d0   : > { %v1870_v58 = vmax.f32 %v1834_v56, %v1867_v57 }
 0x5d2   : > { %1871 = vst.msk [vmem:[#allocation8] sm:$0xff] %vm690_vm1, %v1870_v58 }
 0x5d9   : > { %v1879_v59 = vld [vmem:[#allocation8 + $0x2] sm:$0x3]  ;;  %v1965_v60 = vld [vmem:[#allocation8 + $0x6] sm:$0x3]  ;;  %v1872_v61 = vld [vmem:[#allocation8] sm:$0x3] }
 0x5da   : > { %2325 = vmatmul.msk.f32.vlgmr.msrb.gmra.mxu1 %vm690_vm1, %v1879_v59  ;;  %2340 = vmatmul.msk.f32.vlgmr.msrb.gmra.mxu2 %vm690_vm1, %v1965_v60  ;;  %v1933_v62 = vld [vmem:[#allocation8 + $0x4] sm:$0x3] }
 0x5db   : > { %2326 = vmatmul.msk.f32.vlgmr.msra.gmra.mxu0 %vm690_vm1, %v1872_v61 }
 0x5e2   : > { %2333 = vmatmul.msk.f32.vlgmr.msra.gmra.mxu1 %vm690_vm1, %v1933_v62 }
 0x657   : > { %v1907_v9 = vpop.f32.mrf.mxu1 }
 0x658   : > { %v1930_v10 = vpop.f32.mrf.mxu0 }
 0x659   : > { %v1931_v11 = vadd.f32 %v1930_v10, %v1907_v9 }
 0x65d   : > { %v1993_v15 = vpop.f32.mrf.mxu2 }
 0x65f   : > { %v1961_v12 = vpop.f32.mrf.mxu1 }
 0x660   : > { %v1964_v13 = vadd.f32 %v1961_v12, %v1931_v11 }
 0x662   : > { %v1996_v16 = vadd.f32 %v1993_v15, %v1964_v13 }
 0x664   : > { %v2001_v17 = vadd.f32 %v2361_v14, %v1996_v16 }
 0x666   : > { %v2002_v18 = vmax.f32 %v2001_v17, 0.0 }
 0x668   : > { %2342 = vmatmul.msk.f32.vlgmr.msra.gmra.mxu3 %vm2020_vm7, %v2002_v18 }
 0x6eb   : > { %v2045_v8 = vpop.f32.mrf.mxu3 }
 0x6ec   : > { %v2046_v20 = vadd.f32 %v2362_v19, %v2045_v8 }
 0x6ee   : > { %2049 = vst.msk [vmem:[%s659_s29] sm:$0x3] %vm2048_vm8, %v2046_v20 }
 0x6ef PF: > { %s31_s2 = sadd.s32 1, %s2369_s2  }
 0x6f0   : > { %p28_p5 = scmp.ge.s32.totalorder %s31_s2, 4  }
 0x6f2   :  { %30 = sbr.rel (!%p28_p5) target bundleno = 7 (0x7), region = 153 }

</bundles_post_ra>
